<compile_context>
chip_gen: v7x
topology: tpu7x:2x2x1
jax: 0.10.0
libtpu: 0.0.40
codegen_flags: <defaults>
</compile_context>

<pallas_src>
import functools

import numpy as np
import jax
import jax.numpy as jnp
from jax import lax
from jax.experimental import pallas as pl
from jax.experimental.pallas import tpu as pltpu


# ---------------------------------------------------------------------------
# In-kernel math helpers (elementary ops only -> guaranteed Mosaic lowering)
# ---------------------------------------------------------------------------
_INV_SQRT2 = np.float32(1.0 / np.sqrt(2.0))


def _erf(x):
    # Abramowitz & Stegun 7.1.26, max abs error ~1.5e-7 (below fp32 noise here).
    # The divide is pushed onto the EUP via pl.reciprocal(approx=True).
    a1, a2, a3, a4, a5 = 0.254829592, -0.284496736, 1.421413741, -1.453152027, 1.061405429
    p = 0.3275911
    s = jnp.where(x >= 0.0, 1.0, -1.0)
    ax = jnp.abs(x)
    t = pl.reciprocal(1.0 + p * ax, approx=True)
    poly = ((((a5 * t + a4) * t + a3) * t + a2) * t + a1) * t
    return s * (1.0 - poly * jnp.exp(-ax * ax))


def _gelu(x):
    # nn.GELU() default (exact erf formulation)
    return 0.5 * x * (1.0 + _erf(x * _INV_SQRT2))


# ---------------------------------------------------------------------------
# Pallas kernel: fused (W @ patches + b) -> activation, lane-dense output
# ---------------------------------------------------------------------------
def _gemm_bias_act_kernel(w_ref, p_ref, b_ref, o_ref, *, act):
    acc = jnp.dot(w_ref[...], p_ref[...], preferred_element_type=jnp.float32)
    acc = acc + b_ref[...]                      # [Cout, 1] broadcast over lanes
    if act == "gelu":
        acc = _gelu(acc)
    elif act == "tanh":
        acc = jnp.tanh(acc)
    o_ref[...] = acc.astype(o_ref.dtype)


def _pick_tm(m):
    # Prefer >=2 lane-dense (multiple-of-128) grid steps so both v7x TensorCores
    # get work; otherwise a single full-width block (per-step overhead ~0.35us,
    # so never go below M/2).
    if m % 256 == 0:
        return m // 2
    return m


def _gemm_bias_act(w2d, patches, bias, act):
    """w2d: [Cout, K], patches: [K, M], bias: [Cout] -> [Cout, M] fp32.

    M = N*OH*OW sits on the lane axis of both the patch operand and the output,
    so stores are unmasked regardless of how small Cout is.
    """
    cout, k = w2d.shape
    k2, m = patches.shape
    assert k == k2
    tm = _pick_tm(m)
    return pl.pallas_call(
        functools.partial(_gemm_bias_act_kernel, act=act),
        out_shape=jax.ShapeDtypeStruct((cout, m), jnp.float32),
        grid=(m // tm,),
        in_specs=[
            pl.BlockSpec((cout, k), lambda i: (0, 0)),
            pl.BlockSpec((k, tm), lambda i: (0, i)),
            pl.BlockSpec((cout, 1), lambda i: (0, 0)),
        ],
        out_specs=pl.BlockSpec((cout, tm), lambda i: (0, i)),
        compiler_params=pltpu.CompilerParams(dimension_semantics=("parallel",)),
    )(w2d, patches, bias.reshape(cout, 1))


# ---------------------------------------------------------------------------
# Glue: padding / zero-insertion / patch extraction (cheap XLA data movement)
# Activations are kept channels-first [C, N, H, W] between layers.
# ---------------------------------------------------------------------------
def _im2col(x_cnhw, k):
    # x: [C, N, HP, WP] -> patches [k*k*C, N*OH*OW]; K ordered (kh, kw, c).
    c, n, hp, wp = x_cnhw.shape
    oh, ow = hp - k + 1, wp - k + 1
    taps = [x_cnhw[:, :, kh:kh + oh, kw:kw + ow]
            for kh in range(k) for kw in range(k)]      # each [C, N, OH, OW]
    p = jnp.stack(taps, axis=0)                         # [k*k, C, N, OH, OW]
    return p.reshape(k * k * c, n * oh * ow), (n, oh, ow)


def _convtranspose_weight_to_mat(w_t):
    # PyTorch ConvTranspose2d weight [Cin, Cout, KH, KW] -> [Cout, KH*KW*Cin]
    # of the equivalent stride-1 direct conv (spatial flip, in/out swap).
    wf = w_t[:, :, ::-1, ::-1]                          # [Cin, Cout, KH, KW]
    return jnp.transpose(wf, (1, 2, 3, 0)).reshape(w_t.shape[1], -1)


def _conv_weight_to_mat(w):
    # PyTorch Conv2d weight [Cout, Cin, KH, KW] -> [Cout, KH*KW*Cin]
    return jnp.transpose(w, (0, 2, 3, 1)).reshape(w.shape[0], -1)


def _conv_transpose2d(x, w_t, b, act):
    # ConvTranspose2d(k=3, stride=2, padding=1, output_padding=1) ==
    #   zero-insertion (interior pad 1) + pad ((1,2),(1,2)) + stride-1 conv
    #   with the flipped kernel.  Single lax.pad does dilation + edge padding.
    xp = lax.pad(x, jnp.array(0.0, x.dtype),
                 ((0, 0, 0), (0, 0, 0), (1, 2, 1), (1, 2, 1)))
    patches, (n, oh, ow) = _im2col(xp, 3)
    y = _gemm_bias_act(_convtranspose_weight_to_mat(w_t), patches, b, act)
    return y.reshape(w_t.shape[1], n, oh, ow)


def _conv2d(x, w, b, act):
    # Conv2d(k=3, stride=1, padding=1)
    xp = jnp.pad(x, ((0, 0), (0, 0), (1, 1), (1, 1)))
    patches, (n, oh, ow) = _im2col(xp, 3)
    y = _gemm_bias_act(_conv_weight_to_mat(w), patches, b, act)
    return y.reshape(w.shape[0], n, oh, ow)


# ---------------------------------------------------------------------------
# Decoder forward (Pallas) and a plain-JAX reference for verification
# ---------------------------------------------------------------------------
def decoder_forward(params, x_nchw):
    x = jnp.transpose(x_nchw.astype(jnp.float32), (1, 0, 2, 3))    # -> [C, N, H, W]
    x = _conv_transpose2d(x, params["w1"], params["b1"], act="gelu")
    x = _conv_transpose2d(x, params["w2"], params["b2"], act="gelu")
    x = _conv2d(x, params["w3"], params["b3"], act="gelu")
    x = _conv_transpose2d(x, params["w4"], params["b4"], act="tanh")
    return jnp.transpose(x, (1, 0, 2, 3))                          # -> NCHW


def decoder_reference(params, x_nchw):
    # Pure-JAX (XLA conv) reference, same math, for correctness checking.
    dn = ("NCHW", "OIHW", "NCHW")
    gelu = lambda v: 0.5 * v * (1.0 + jax.scipy.special.erf(v / np.sqrt(2.0)))

    def ct(x, w_t, b):
        w = jnp.transpose(w_t[:, :, ::-1, ::-1], (1, 0, 2, 3))     # -> OIHW
        y = lax.conv_general_dilated(x, w, window_strides=(1, 1),
                                     padding=((1, 2), (1, 2)), lhs_dilation=(2, 2),
                                     dimension_numbers=dn)
        return y + b.reshape(1, -1, 1, 1)

    def cv(x, w, b):
        y = lax.conv_general_dilated(x, w, window_strides=(1, 1),
                                     padding=((1, 1), (1, 1)), dimension_numbers=dn)
        return y + b.reshape(1, -1, 1, 1)

    x = x_nchw.astype(jnp.float32)
    x = gelu(ct(x, params["w1"], params["b1"]))
    x = gelu(ct(x, params["w2"], params["b2"]))
    x = gelu(cv(x, params["w3"], params["b3"]))
    x = jnp.tanh(ct(x, params["w4"], params["b4"]))
    return x


def init_params(key, num_input_channels, base_channel_size):
    c = base_channel_size
    ks = jax.random.split(key, 8)

    def u(k, shape, fan_in):
        bound = 1.0 / np.sqrt(fan_in)
        return jax.random.uniform(k, shape, jnp.float32, -bound, bound)

    return {
        # ConvTranspose2d weights are [Cin, Cout, KH, KW] (PyTorch convention)
        "w1": u(ks[0], (2 * c, 2 * c, 3, 3), 2 * c * 9), "b1": u(ks[1], (2 * c,), 2 * c * 9),
        "w2": u(ks[2], (2 * c, c, 3, 3), 2 * c * 9),     "b2": u(ks[3], (c,), 2 * c * 9),
        # Conv2d weight is [Cout, Cin, KH, KW]
        "w3": u(ks[4], (c, c, 3, 3), c * 9),             "b3": u(ks[5], (c,), c * 9),
        "w4": u(ks[6], (c, num_input_channels, 3, 3), c * 9),
        "b4": u(ks[7], (num_input_channels,), c * 9),
    }


if __name__ == "__main__":
    num_input_channels = 1
    base_channel_size = 8      # c_hid
    batch, spatial = 2, 4      # latent feature map is [N, 2*c_hid, 4, 4]

    root = jax.random.PRNGKey(0)
    k_param, k_x = jax.random.split(root)
    params = init_params(k_param, num_input_channels, base_channel_size)
    x = jax.random.normal(k_x, (batch, 2 * base_channel_size, spatial, spatial), jnp.float32)

    out = jax.jit(decoder_forward)(params, x)
    out = jax.block_until_ready(out)

    assert out.shape == (batch, num_input_channels, spatial * 8, spatial * 8), out.shape

    ref = jax.block_until_ready(jax.jit(decoder_reference)(params, x))
    assert bool(jnp.allclose(out, ref, atol=2e-2, rtol=2e-2)), float(jnp.max(jnp.abs(out - ref)))

    print("KERNEL_OK")
</pallas_src>

<mosaic_0001>
module attributes {stable_mosaic.version = 11 : i64} {
  func.func @_gemm_bias_act_kernel(%arg0: i32, %arg1: memref<16x144xf32, #tpu.memory_space<vmem>>, %arg2: memref<144x128xf32, #tpu.memory_space<vmem>>, %arg3: memref<16x1xf32, #tpu.memory_space<vmem>>, %arg4: memref<16x128xf32, #tpu.memory_space<vmem>>) attributes {dimension_semantics = [#tpu.dimension_semantics<parallel>], iteration_bounds = array<i64: 1>, scalar_prefetch = 0 : i64, scratch_operands = 0 : i64, tpu.core_type = #tpu.core_type<tc>, window_params = [{pipeline_mode = #tpu.pipeline_mode<synchronous>, transform_indices = @transform_0, window_bounds = array<i64: 16, 144>}, {transform_indices = @transform_1, window_bounds = array<i64: 144, 128>}, {pipeline_mode = #tpu.pipeline_mode<synchronous>, transform_indices = @transform_2, window_bounds = array<i64: 16, 1>}, {transform_indices = @transform_3, window_bounds = array<i64: 16, 128>}]} {
    %c0 = arith.constant 0 : index
    %c0_0 = arith.constant 0 : index
    %0 = vector.load %arg1[%c0, %c0_0] : memref<16x144xf32, #tpu.memory_space<vmem>>, vector<16x144xf32>
    %c0_1 = arith.constant 0 : index
    %c0_2 = arith.constant 0 : index
    %1 = vector.load %arg2[%c0_1, %c0_2] : memref<144x128xf32, #tpu.memory_space<vmem>>, vector<144x128xf32>
    %cst = arith.constant dense<0.000000e+00> : vector<16x128xf32>
    %2 = tpu.matmul %0, %1, %cst {dimension_numbers = #tpu.dot_dimension_numbers<[1], [0], [0], [1], [0, 0, 1, 1], [], []>} : vector<16x144xf32>, vector<144x128xf32>, vector<16x128xf32> -> vector<16x128xf32>
    %c0_3 = arith.constant 0 : index
    %c0_4 = arith.constant 0 : index
    %3 = vector.load %arg3[%c0_3, %c0_4] : memref<16x1xf32, #tpu.memory_space<vmem>>, vector<16x1xf32>
    %4 = vector.broadcast %3 : vector<16x1xf32> to vector<16x128xf32>
    %5 = arith.addf %2, %4 : vector<16x128xf32>
    %cst_5 = arith.constant 5.000000e-01 : f32
    %6 = vector.broadcast %cst_5 : f32 to vector<16x128xf32>
    %7 = arith.mulf %6, %5 : vector<16x128xf32>
    %cst_6 = arith.constant 0.707106769 : f32
    %8 = vector.broadcast %cst_6 : f32 to vector<16x128xf32>
    %9 = arith.mulf %5, %8 : vector<16x128xf32>
    %cst_7 = arith.constant 0.000000e+00 : f32
    %10 = vector.broadcast %cst_7 : f32 to vector<16x128xf32>
    %11 = arith.cmpf oge, %9, %10 : vector<16x128xf32>
    %cst_8 = arith.constant 1.000000e+00 : f32
    %cst_9 = arith.constant -1.000000e+00 : f32
    %12 = vector.broadcast %cst_8 : f32 to vector<16x128xf32>
    %13 = vector.broadcast %cst_9 : f32 to vector<16x128xf32>
    %14 = arith.select %11, %12, %13 : vector<16x128xi1>, vector<16x128xf32>
    %15 = math.absf %9 : vector<16x128xf32>
    %cst_10 = arith.constant 0.327591091 : f32
    %16 = vector.broadcast %cst_10 : f32 to vector<16x128xf32>
    %17 = arith.mulf %16, %15 : vector<16x128xf32>
    %cst_11 = arith.constant 1.000000e+00 : f32
    %18 = vector.broadcast %cst_11 : f32 to vector<16x128xf32>
    %19 = arith.addf %18, %17 : vector<16x128xf32>
    %20 = tpu.reciprocal %19 {approx = true} : vector<16x128xf32> -> vector<16x128xf32>
    %cst_12 = arith.constant 1.06140542 : f32
    %21 = vector.broadcast %cst_12 : f32 to vector<16x128xf32>
    %22 = arith.mulf %21, %20 : vector<16x128xf32>
    %cst_13 = arith.constant -1.45315206 : f32
    %23 = vector.broadcast %cst_13 : f32 to vector<16x128xf32>
    %24 = arith.addf %22, %23 : vector<16x128xf32>
    %25 = arith.mulf %24, %20 : vector<16x128xf32>
    %cst_14 = arith.constant 1.42141378 : f32
    %26 = vector.broadcast %cst_14 : f32 to vector<16x128xf32>
    %27 = arith.addf %25, %26 : vector<16x128xf32>
    %28 = arith.mulf %27, %20 : vector<16x128xf32>
    %cst_15 = arith.constant -0.284496725 : f32
    %29 = vector.broadcast %cst_15 : f32 to vector<16x128xf32>
    %30 = arith.addf %28, %29 : vector<16x128xf32>
    %31 = arith.mulf %30, %20 : vector<16x128xf32>
    %cst_16 = arith.constant 0.254829586 : f32
    %32 = vector.broadcast %cst_16 : f32 to vector<16x128xf32>
    %33 = arith.addf %31, %32 : vector<16x128xf32>
    %34 = arith.mulf %33, %20 : vector<16x128xf32>
    %cst_17 = arith.constant 0.000000e+00 : f32
    %35 = vector.broadcast %cst_17 : f32 to vector<16x128xf32>
    %36 = arith.subf %35, %15 : vector<16x128xf32>
    %37 = arith.mulf %36, %15 : vector<16x128xf32>
    %38 = math.exp %37 : vector<16x128xf32>
    %39 = arith.mulf %34, %38 : vector<16x128xf32>
    %cst_18 = arith.constant 1.000000e+00 : f32
    %40 = vector.broadcast %cst_18 : f32 to vector<16x128xf32>
    %41 = arith.subf %40, %39 : vector<16x128xf32>
    %42 = arith.mulf %14, %41 : vector<16x128xf32>
    %cst_19 = arith.constant 1.000000e+00 : f32
    %43 = vector.broadcast %cst_19 : f32 to vector<16x128xf32>
    %44 = arith.addf %43, %42 : vector<16x128xf32>
    %45 = arith.mulf %7, %44 : vector<16x128xf32>
    %c0_20 = arith.constant 0 : index
    %c0_21 = arith.constant 0 : index
    %46 = vector.load %arg4[%c0_20, %c0_21] : memref<16x128xf32, #tpu.memory_space<vmem>>, vector<16x128xf32>
    tpu.vector_store %arg4[%c0_20, %c0_21], %45 {strides = array<i32>} : memref<16x128xf32, #tpu.memory_space<vmem>>, vector<16x128xf32>,
    return
  }
  func.func @transform_0(%arg0: i32) -> (i32, i32) {
    %c0_i32 = arith.constant 0 : i32
    %c0_i32_0 = arith.constant 0 : i32
    %c0_i32_1 = arith.constant 0 : i32
    return %c0_i32, %c0_i32_0 : i32, i32
  }
  func.func @transform_1(%arg0: i32) -> (i32, i32) {
    %c0_i32 = arith.constant 0 : i32
    %c0_i32_0 = arith.constant 0 : i32
    return %c0_i32, %arg0 : i32, i32
  }
  func.func @transform_2(%arg0: i32) -> (i32, i32) {
    %c0_i32 = arith.constant 0 : i32
    %c0_i32_0 = arith.constant 0 : i32
    %c0_i32_1 = arith.constant 0 : i32
    return %c0_i32, %c0_i32_0 : i32, i32
  }
  func.func @transform_3(%arg0: i32) -> (i32, i32) {
    %c0_i32 = arith.constant 0 : i32
    %c0_i32_0 = arith.constant 0 : i32
    return %c0_i32, %arg0 : i32, i32
  }
}

module attributes {stable_mosaic.version = 11 : i64} {
  func.func @_gemm_bias_act_kernel(%arg0: i32, %arg1: memref<8x144xf32, #tpu.memory_space<vmem>>, %arg2: memref<144x256xf32, #tpu.memory_space<vmem>>, %arg3: memref<8x1xf32, #tpu.memory_space<vmem>>, %arg4: memref<8x256xf32, #tpu.memory_space<vmem>>) attributes {dimension_semantics = [#tpu.dimension_semantics<parallel>], iteration_bounds = array<i64: 2>, scalar_prefetch = 0 : i64, scratch_operands = 0 : i64, tpu.core_type = #tpu.core_type<tc>, window_params = [{pipeline_mode = #tpu.pipeline_mode<synchronous>, transform_indices = @transform_0, window_bounds = array<i64: 8, 144>}, {transform_indices = @transform_1, window_bounds = array<i64: 144, 256>}, {pipeline_mode = #tpu.pipeline_mode<synchronous>, transform_indices = @transform_2, window_bounds = array<i64: 8, 1>}, {transform_indices = @transform_3, window_bounds = array<i64: 8, 256>}]} {
    %c0 = arith.constant 0 : index
    %c0_0 = arith.constant 0 : index
    %0 = vector.load %arg1[%c0, %c0_0] : memref<8x144xf32, #tpu.memory_space<vmem>>, vector<8x144xf32>
    %c0_1 = arith.constant 0 : index
    %c0_2 = arith.constant 0 : index
    %1 = vector.load %arg2[%c0_1, %c0_2] : memref<144x256xf32, #tpu.memory_space<vmem>>, vector<144x256xf32>
    %cst = arith.constant dense<0.000000e+00> : vector<8x256xf32>
    %2 = tpu.matmul %0, %1, %cst {dimension_numbers = #tpu.dot_dimension_numbers<[1], [0], [0], [1], [0, 0, 1, 1], [], []>} : vector<8x144xf32>, vector<144x256xf32>, vector<8x256xf32> -> vector<8x256xf32>
    %c0_3 = arith.constant 0 : index
    %c0_4 = arith.constant 0 : index
    %3 = vector.load %arg3[%c0_3, %c0_4] : memref<8x1xf32, #tpu.memory_space<vmem>>, vector<8x1xf32>
    %4 = vector.broadcast %3 : vector<8x1xf32> to vector<8x256xf32>
    %5 = arith.addf %2, %4 : vector<8x256xf32>
    %cst_5 = arith.constant 5.000000e-01 : f32
    %6 = vector.broadcast %cst_5 : f32 to vector<8x256xf32>
    %7 = arith.mulf %6, %5 : vector<8x256xf32>
    %cst_6 = arith.constant 0.707106769 : f32
    %8 = vector.broadcast %cst_6 : f32 to vector<8x256xf32>
    %9 = arith.mulf %5, %8 : vector<8x256xf32>
    %cst_7 = arith.constant 0.000000e+00 : f32
    %10 = vector.broadcast %cst_7 : f32 to vector<8x256xf32>
    %11 = arith.cmpf oge, %9, %10 : vector<8x256xf32>
    %cst_8 = arith.constant 1.000000e+00 : f32
    %cst_9 = arith.constant -1.000000e+00 : f32
    %12 = vector.broadcast %cst_8 : f32 to vector<8x256xf32>
    %13 = vector.broadcast %cst_9 : f32 to vector<8x256xf32>
    %14 = arith.select %11, %12, %13 : vector<8x256xi1>, vector<8x256xf32>
    %15 = math.absf %9 : vector<8x256xf32>
    %cst_10 = arith.constant 0.327591091 : f32
    %16 = vector.broadcast %cst_10 : f32 to vector<8x256xf32>
    %17 = arith.mulf %16, %15 : vector<8x256xf32>
    %cst_11 = arith.constant 1.000000e+00 : f32
    %18 = vector.broadcast %cst_11 : f32 to vector<8x256xf32>
    %19 = arith.addf %18, %17 : vector<8x256xf32>
    %20 = tpu.reciprocal %19 {approx = true} : vector<8x256xf32> -> vector<8x256xf32>
    %cst_12 = arith.constant 1.06140542 : f32
    %21 = vector.broadcast %cst_12 : f32 to vector<8x256xf32>
    %22 = arith.mulf %21, %20 : vector<8x256xf32>
    %cst_13 = arith.constant -1.45315206 : f32
    %23 = vector.broadcast %cst_13 : f32 to vector<8x256xf32>
    %24 = arith.addf %22, %23 : vector<8x256xf32>
    %25 = arith.mulf %24, %20 : vector<8x256xf32>
    %cst_14 = arith.constant 1.42141378 : f32
    %26 = vector.broadcast %cst_14 : f32 to vector<8x256xf32>
    %27 = arith.addf %25, %26 : vector<8x256xf32>
    %28 = arith.mulf %27, %20 : vector<8x256xf32>
    %cst_15 = arith.constant -0.284496725 : f32
    %29 = vector.broadcast %cst_15 : f32 to vector<8x256xf32>
    %30 = arith.addf %28, %29 : vector<8x256xf32>
    %31 = arith.mulf %30, %20 : vector<8x256xf32>
    %cst_16 = arith.constant 0.254829586 : f32
    %32 = vector.broadcast %cst_16 : f32 to vector<8x256xf32>
    %33 = arith.addf %31, %32 : vector<8x256xf32>
    %34 = arith.mulf %33, %20 : vector<8x256xf32>
    %cst_17 = arith.constant 0.000000e+00 : f32
    %35 = vector.broadcast %cst_17 : f32 to vector<8x256xf32>
    %36 = arith.subf %35, %15 : vector<8x256xf32>
    %37 = arith.mulf %36, %15 : vector<8x256xf32>
    %38 = math.exp %37 : vector<8x256xf32>
    %39 = arith.mulf %34, %38 : vector<8x256xf32>
    %cst_18 = arith.constant 1.000000e+00 : f32
    %40 = vector.broadcast %cst_18 : f32 to vector<8x256xf32>
    %41 = arith.subf %40, %39 : vector<8x256xf32>
    %42 = arith.mulf %14, %41 : vector<8x256xf32>
    %cst_19 = arith.constant 1.000000e+00 : f32
    %43 = vector.broadcast %cst_19 : f32 to vector<8x256xf32>
    %44 = arith.addf %43, %42 : vector<8x256xf32>
    %45 = arith.mulf %7, %44 : vector<8x256xf32>
    %c0_20 = arith.constant 0 : index
    %c0_21 = arith.constant 0 : index
    %46 = vector.load %arg4[%c0_20, %c0_21] : memref<8x256xf32, #tpu.memory_space<vmem>>, vector<8x256xf32>
    tpu.vector_store %arg4[%c0_20, %c0_21], %45 {strides = array<i32>} : memref<8x256xf32, #tpu.memory_space<vmem>>, vector<8x256xf32>,
    return
  }
  func.func @transform_0(%arg0: i32) -> (i32, i32) {
    %c0_i32 = arith.constant 0 : i32
    %c0_i32_0 = arith.constant 0 : i32
    %c0_i32_1 = arith.constant 0 : i32
    return %c0_i32, %c0_i32_0 : i32, i32
  }
  func.func @transform_1(%arg0: i32) -> (i32, i32) {
    %c0_i32 = arith.constant 0 : i32
    %c0_i32_0 = arith.constant 0 : i32
    return %c0_i32, %arg0 : i32, i32
  }
  func.func @transform_2(%arg0: i32) -> (i32, i32) {
    %c0_i32 = arith.constant 0 : i32
    %c0_i32_0 = arith.constant 0 : i32
    %c0_i32_1 = arith.constant 0 : i32
    return %c0_i32, %c0_i32_0 : i32, i32
  }
  func.func @transform_3(%arg0: i32) -> (i32, i32) {
    %c0_i32 = arith.constant 0 : i32
    %c0_i32_0 = arith.constant 0 : i32
    return %c0_i32, %arg0 : i32, i32
  }
}

module attributes {stable_mosaic.version = 11 : i64} {
  func.func @_gemm_bias_act_kernel(%arg0: i32, %arg1: memref<8x72xf32, #tpu.memory_space<vmem>>, %arg2: memref<72x256xf32, #tpu.memory_space<vmem>>, %arg3: memref<8x1xf32, #tpu.memory_space<vmem>>, %arg4: memref<8x256xf32, #tpu.memory_space<vmem>>) attributes {dimension_semantics = [#tpu.dimension_semantics<parallel>], iteration_bounds = array<i64: 2>, scalar_prefetch = 0 : i64, scratch_operands = 0 : i64, tpu.core_type = #tpu.core_type<tc>, window_params = [{pipeline_mode = #tpu.pipeline_mode<synchronous>, transform_indices = @transform_0, window_bounds = array<i64: 8, 72>}, {transform_indices = @transform_1, window_bounds = array<i64: 72, 256>}, {pipeline_mode = #tpu.pipeline_mode<synchronous>, transform_indices = @transform_2, window_bounds = array<i64: 8, 1>}, {transform_indices = @transform_3, window_bounds = array<i64: 8, 256>}]} {
    %c0 = arith.constant 0 : index
    %c0_0 = arith.constant 0 : index
    %0 = vector.load %arg1[%c0, %c0_0] : memref<8x72xf32, #tpu.memory_space<vmem>>, vector<8x72xf32>
    %c0_1 = arith.constant 0 : index
    %c0_2 = arith.constant 0 : index
    %1 = vector.load %arg2[%c0_1, %c0_2] : memref<72x256xf32, #tpu.memory_space<vmem>>, vector<72x256xf32>
    %cst = arith.constant dense<0.000000e+00> : vector<8x256xf32>
    %2 = tpu.matmul %0, %1, %cst {dimension_numbers = #tpu.dot_dimension_numbers<[1], [0], [0], [1], [0, 0, 1, 1], [], []>} : vector<8x72xf32>, vector<72x256xf32>, vector<8x256xf32> -> vector<8x256xf32>
    %c0_3 = arith.constant 0 : index
    %c0_4 = arith.constant 0 : index
    %3 = vector.load %arg3[%c0_3, %c0_4] : memref<8x1xf32, #tpu.memory_space<vmem>>, vector<8x1xf32>
    %4 = vector.broadcast %3 : vector<8x1xf32> to vector<8x256xf32>
    %5 = arith.addf %2, %4 : vector<8x256xf32>
    %cst_5 = arith.constant 5.000000e-01 : f32
    %6 = vector.broadcast %cst_5 : f32 to vector<8x256xf32>
    %7 = arith.mulf %6, %5 : vector<8x256xf32>
    %cst_6 = arith.constant 0.707106769 : f32
    %8 = vector.broadcast %cst_6 : f32 to vector<8x256xf32>
    %9 = arith.mulf %5, %8 : vector<8x256xf32>
    %cst_7 = arith.constant 0.000000e+00 : f32
    %10 = vector.broadcast %cst_7 : f32 to vector<8x256xf32>
    %11 = arith.cmpf oge, %9, %10 : vector<8x256xf32>
    %cst_8 = arith.constant 1.000000e+00 : f32
    %cst_9 = arith.constant -1.000000e+00 : f32
    %12 = vector.broadcast %cst_8 : f32 to vector<8x256xf32>
    %13 = vector.broadcast %cst_9 : f32 to vector<8x256xf32>
    %14 = arith.select %11, %12, %13 : vector<8x256xi1>, vector<8x256xf32>
    %15 = math.absf %9 : vector<8x256xf32>
    %cst_10 = arith.constant 0.327591091 : f32
    %16 = vector.broadcast %cst_10 : f32 to vector<8x256xf32>
    %17 = arith.mulf %16, %15 : vector<8x256xf32>
    %cst_11 = arith.constant 1.000000e+00 : f32
    %18 = vector.broadcast %cst_11 : f32 to vector<8x256xf32>
    %19 = arith.addf %18, %17 : vector<8x256xf32>
    %20 = tpu.reciprocal %19 {approx = true} : vector<8x256xf32> -> vector<8x256xf32>
    %cst_12 = arith.constant 1.06140542 : f32
    %21 = vector.broadcast %cst_12 : f32 to vector<8x256xf32>
    %22 = arith.mulf %21, %20 : vector<8x256xf32>
    %cst_13 = arith.constant -1.45315206 : f32
    %23 = vector.broadcast %cst_13 : f32 to vector<8x256xf32>
    %24 = arith.addf %22, %23 : vector<8x256xf32>
    %25 = arith.mulf %24, %20 : vector<8x256xf32>
    %cst_14 = arith.constant 1.42141378 : f32
    %26 = vector.broadcast %cst_14 : f32 to vector<8x256xf32>
    %27 = arith.addf %25, %26 : vector<8x256xf32>
    %28 = arith.mulf %27, %20 : vector<8x256xf32>
    %cst_15 = arith.constant -0.284496725 : f32
    %29 = vector.broadcast %cst_15 : f32 to vector<8x256xf32>
    %30 = arith.addf %28, %29 : vector<8x256xf32>
    %31 = arith.mulf %30, %20 : vector<8x256xf32>
    %cst_16 = arith.constant 0.254829586 : f32
    %32 = vector.broadcast %cst_16 : f32 to vector<8x256xf32>
    %33 = arith.addf %31, %32 : vector<8x256xf32>
    %34 = arith.mulf %33, %20 : vector<8x256xf32>
    %cst_17 = arith.constant 0.000000e+00 : f32
    %35 = vector.broadcast %cst_17 : f32 to vector<8x256xf32>
    %36 = arith.subf %35, %15 : vector<8x256xf32>
    %37 = arith.mulf %36, %15 : vector<8x256xf32>
    %38 = math.exp %37 : vector<8x256xf32>
    %39 = arith.mulf %34, %38 : vector<8x256xf32>
    %cst_18 = arith.constant 1.000000e+00 : f32
    %40 = vector.broadcast %cst_18 : f32 to vector<8x256xf32>
    %41 = arith.subf %40, %39 : vector<8x256xf32>
    %42 = arith.mulf %14, %41 : vector<8x256xf32>
    %cst_19 = arith.constant 1.000000e+00 : f32
    %43 = vector.broadcast %cst_19 : f32 to vector<8x256xf32>
    %44 = arith.addf %43, %42 : vector<8x256xf32>
    %45 = arith.mulf %7, %44 : vector<8x256xf32>
    %c0_20 = arith.constant 0 : index
    %c0_21 = arith.constant 0 : index
    %46 = vector.load %arg4[%c0_20, %c0_21] : memref<8x256xf32, #tpu.memory_space<vmem>>, vector<8x256xf32>
    tpu.vector_store %arg4[%c0_20, %c0_21], %45 {strides = array<i32>} : memref<8x256xf32, #tpu.memory_space<vmem>>, vector<8x256xf32>,
    return
  }
  func.func @transform_0(%arg0: i32) -> (i32, i32) {
    %c0_i32 = arith.constant 0 : i32
    %c0_i32_0 = arith.constant 0 : i32
    %c0_i32_1 = arith.constant 0 : i32
    return %c0_i32, %c0_i32_0 : i32, i32
  }
  func.func @transform_1(%arg0: i32) -> (i32, i32) {
    %c0_i32 = arith.constant 0 : i32
    %c0_i32_0 = arith.constant 0 : i32
    return %c0_i32, %arg0 : i32, i32
  }
  func.func @transform_2(%arg0: i32) -> (i32, i32) {
    %c0_i32 = arith.constant 0 : i32
    %c0_i32_0 = arith.constant 0 : i32
    %c0_i32_1 = arith.constant 0 : i32
    return %c0_i32, %c0_i32_0 : i32, i32
  }
  func.func @transform_3(%arg0: i32) -> (i32, i32) {
    %c0_i32 = arith.constant 0 : i32
    %c0_i32_0 = arith.constant 0 : i32
    return %c0_i32, %arg0 : i32, i32
  }
}

module attributes {stable_mosaic.version = 11 : i64} {
  func.func @_gemm_bias_act_kernel(%arg0: i32, %arg1: memref<1x72xf32, #tpu.memory_space<vmem>>, %arg2: memref<72x1024xf32, #tpu.memory_space<vmem>>, %arg3: memref<1x1xf32, #tpu.memory_space<vmem>>, %arg4: memref<1x1024xf32, #tpu.memory_space<vmem>>) attributes {dimension_semantics = [#tpu.dimension_semantics<parallel>], iteration_bounds = array<i64: 2>, scalar_prefetch = 0 : i64, scratch_operands = 0 : i64, tpu.core_type = #tpu.core_type<tc>, window_params = [{pipeline_mode = #tpu.pipeline_mode<synchronous>, transform_indices = @transform_0, window_bounds = array<i64: 1, 72>}, {transform_indices = @transform_1, window_bounds = array<i64: 72, 1024>}, {pipeline_mode = #tpu.pipeline_mode<synchronous>, transform_indices = @transform_2, window_bounds = array<i64: 1, 1>}, {transform_indices = @transform_3, window_bounds = array<i64: 1, 1024>}]} {
    %c0 = arith.constant 0 : index
    %c0_0 = arith.constant 0 : index
    %0 = vector.load %arg1[%c0, %c0_0] : memref<1x72xf32, #tpu.memory_space<vmem>>, vector<1x72xf32>
    %c0_1 = arith.constant 0 : index
    %c0_2 = arith.constant 0 : index
    %1 = vector.load %arg2[%c0_1, %c0_2] : memref<72x1024xf32, #tpu.memory_space<vmem>>, vector<72x1024xf32>
    %cst = arith.constant dense<0.000000e+00> : vector<1x1024xf32>
    %2 = tpu.matmul %0, %1, %cst {dimension_numbers = #tpu.dot_dimension_numbers<[1], [0], [0], [1], [0, 0, 1, 1], [], []>} : vector<1x72xf32>, vector<72x1024xf32>, vector<1x1024xf32> -> vector<1x1024xf32>
    %c0_3 = arith.constant 0 : index
    %c0_4 = arith.constant 0 : index
    %3 = vector.load %arg3[%c0_3, %c0_4] : memref<1x1xf32, #tpu.memory_space<vmem>>, vector<1x1xf32>
    %4 = vector.broadcast %3 : vector<1x1xf32> to vector<1x1024xf32>
    %5 = arith.addf %2, %4 : vector<1x1024xf32>
    %6 = math.tanh %5 : vector<1x1024xf32>
    %c0_5 = arith.constant 0 : index
    %c0_6 = arith.constant 0 : index
    %7 = vector.load %arg4[%c0_5, %c0_6] : memref<1x1024xf32, #tpu.memory_space<vmem>>, vector<1x1024xf32>
    tpu.vector_store %arg4[%c0_5, %c0_6], %6 {strides = array<i32>} : memref<1x1024xf32, #tpu.memory_space<vmem>>, vector<1x1024xf32>,
    return
  }
  func.func @transform_0(%arg0: i32) -> (i32, i32) {
    %c0_i32 = arith.constant 0 : i32
    %c0_i32_0 = arith.constant 0 : i32
    %c0_i32_1 = arith.constant 0 : i32
    return %c0_i32, %c0_i32_0 : i32, i32
  }
  func.func @transform_1(%arg0: i32) -> (i32, i32) {
    %c0_i32 = arith.constant 0 : i32
    %c0_i32_0 = arith.constant 0 : i32
    return %c0_i32, %arg0 : i32, i32
  }
  func.func @transform_2(%arg0: i32) -> (i32, i32) {
    %c0_i32 = arith.constant 0 : i32
    %c0_i32_0 = arith.constant 0 : i32
    %c0_i32_1 = arith.constant 0 : i32
    return %c0_i32, %c0_i32_0 : i32, i32
  }
  func.func @transform_3(%arg0: i32) -> (i32, i32) {
    %c0_i32 = arith.constant 0 : i32
    %c0_i32_0 = arith.constant 0 : i32
    return %c0_i32, %arg0 : i32, i32
  }
}

</mosaic_0001>

<bundles_post_ra>
// kernel: decoder_forward.4
= control target key start
LH: loop header
LB: loop body
LE: loop exit
PB: predicated region body
PF: predicated region fallthrough
CT: control target
= control target key end

     0   :  { %v247_v0 = vmov 0.0|0.0   ;;  %v248_v6 = vmov 0   ;;  %vm48_vm0 = vcmask 130048   ;;  %s366_s1 = inlined_call_operand.vmem [shape: f32[144,128], index: 1, kind: input, shape index: {}]   ;;  %s367_s0 = inlined_call_operand.vmem [shape: f32[16,144], index: 0, kind: input, shape index: {}]   ;;  %s368_s2 = inlined_call_operand.vmem [shape: f32[16,1], index: 2, kind: input, shape index: {}]   ;;  %s369_s3 = inlined_call_operand.vmem [shape: f32[16,128], index: 3, kind: output, shape index: {}]  }
   0x1   :  { %190 = vmatprep.subr.bf16.mxu0 %v247_v0  ;;  %217 = vmatprep.subr.bf16.mxu1 %v247_v0  ;;  %v18_v1 = vld [vmem:[%s366_s1] sm:$0xff]  ;;  %v19_v2 = vld [vmem:[%s366_s1 + $0x8] sm:$0xff]  ;;  %v20_v3 = vld [vmem:[%s366_s1 + $0x10] sm:$0xff] }
   0x2   :  { %v191_v4 = vpack.c.bf16 %v19_v2, %v18_v1  ;;  %v21_v5 = vld [vmem:[%s366_s1 + $0x18] sm:$0xff]  ;;  %238 = vset.pattern.permute.xlu0 %v248_v6  ;;  %v22_v8 = vld [vmem:[%s366_s1 + $0x20] sm:$0xff]  ;;  %v23_v9 = vld [vmem:[%s366_s1 + $0x28] sm:$0xff] }
   0x3   :  { %v194_v7 = vpack.c.bf16 %v21_v5, %v20_v3  ;;  %v15_v10 = vld [vmem:[%s367_s0 + $0x8] sm:$0xff]  ;;  %v17_v11 = vld [vmem:[%s367_s0 + $0x18] sm:$0xff]  ;;  %v197_v12 = vpack.c.bf16 %v23_v9, %v22_v8  ;;  %v36_v13 = vld [vmem:[%s368_s2] sm:$0xff] }
   0x4   :  { %192 = vmatpush1.bf16.msra.mxu0 %v191_v4  ;;  %226 = vmatpush1.bf16.msra.mxu1 %v191_v4  ;;  %v24_v14 = vld [vmem:[%s366_s1 + $0x30] sm:$0xff]  ;;  %v25_v15 = vld [vmem:[%s366_s1 + $0x38] sm:$0xff]  ;;  %v37_v17 = vld [vmem:[%s368_s2 + $0x8] sm:$0xff] }
   0x5   :  { %193 = vmatprep.subr.bf16.mxu0 %v247_v0  ;;  %218 = vmatprep.subr.bf16.mxu1 %v247_v0  ;;  %v200_v16 = vpack.c.bf16 %v25_v15, %v24_v14  ;;  %v26_v18 = vld [vmem:[%s366_s1 + $0x40] sm:$0xff]  ;;  %v27_v19 = vld [vmem:[%s366_s1 + $0x48] sm:$0xff]  ;;  %v28_v21 = vld [vmem:[%s366_s1 + $0x50] sm:$0xff] }
   0x6   :  { %188 = vmatprep.mubr.msk.f32.mxu0 %vm48_vm0, %v15_v10  ;;  %189 = vmatprep.mubr.msk.f32.mxu1 %vm48_vm0, %v17_v11  ;;  %v203_v20 = vpack.c.bf16 %v27_v19, %v26_v18  ;;  %v29_v22 = vld [vmem:[%s366_s1 + $0x58] sm:$0xff]  ;;  %v30_v24 = vld [vmem:[%s366_s1 + $0x60] sm:$0xff]  ;;  %v31_v25 = vld [vmem:[%s366_s1 + $0x68] sm:$0xff]  ;;  %v249_v18 = vmov -1.0  }
   0x7   :  { %40 = vperm.xlu0 %238, %v36_v13   ;;  %v206_v23 = vpack.c.bf16 %v29_v22, %v28_v21  ;;  %v209_v26 = vpack.c.bf16 %v31_v25, %v30_v24  ;;  %v32_v27 = vld [vmem:[%s366_s1 + $0x70] sm:$0xff]  ;;  %v33_v28 = vld [vmem:[%s366_s1 + $0x78] sm:$0xff]  ;;  %v34_v30 = vld [vmem:[%s366_s1 + $0x80] sm:$0xff] }
   0x8   :  { %195 = vmatpush1.bf16.msra.mxu0 %v194_v7  ;;  %227 = vmatpush1.bf16.msra.mxu1 %v194_v7  ;;  %v212_v29 = vpack.c.bf16 %v33_v28, %v32_v27  ;;  %v35_v31 = vld [vmem:[%s366_s1 + $0x88] sm:$0xff]  ;;  %v14_v33 = vld [vmem:[%s367_s0] sm:$0xff]  ;;  %v16_v34 = vld [vmem:[%s367_s0 + $0x10] sm:$0xff] }
   0x9   :  { %196 = vmatprep.subr.bf16.mxu0 %v247_v0  ;;  %219 = vmatprep.subr.bf16.mxu1 %v247_v0  ;;  %v215_v32 = vpack.c.bf16 %v35_v31, %v34_v30 }
   0xb   :  { %45 = vperm.xlu0 %238, %v37_v17  }
   0xc   :  { %198 = vmatpush1.bf16.msra.mxu0 %v197_v12  ;;  %228 = vmatpush1.bf16.msra.mxu1 %v197_v12 }
   0xd   :  { %199 = vmatprep.subr.bf16.mxu0 %v247_v0  ;;  %220 = vmatprep.subr.bf16.mxu1 %v247_v0 }
  0x10   :  { %201 = vmatpush1.bf16.msra.mxu0 %v200_v16  ;;  %229 = vmatpush1.bf16.msra.mxu1 %v200_v16 }
  0x11   :  { %202 = vmatprep.subr.bf16.mxu0 %v247_v0  ;;  %221 = vmatprep.subr.bf16.mxu1 %v247_v0 }
  0x14   :  { %204 = vmatpush1.bf16.msra.mxu0 %v203_v20  ;;  %230 = vmatpush1.bf16.msra.mxu1 %v203_v20 }
  0x15   :  { %205 = vmatprep.subr.bf16.mxu0 %v247_v0  ;;  %222 = vmatprep.subr.bf16.mxu1 %v247_v0 }
  0x18   :  { %207 = vmatpush1.bf16.msra.mxu0 %v206_v23  ;;  %231 = vmatpush1.bf16.msra.mxu1 %v206_v23 }
  0x19   :  { %208 = vmatprep.subr.bf16.mxu0 %v247_v0  ;;  %223 = vmatprep.subr.bf16.mxu1 %v247_v0 }
  0x1c   :  { %210 = vmatpush1.bf16.msra.mxu0 %v209_v26  ;;  %232 = vmatpush1.bf16.msra.mxu1 %v209_v26 }
  0x1d   :  { %211 = vmatprep.subr.bf16.mxu0 %v247_v0  ;;  %224 = vmatprep.subr.bf16.mxu1 %v247_v0 }
  0x20   :  { %213 = vmatpush1.bf16.msra.mxu0 %v212_v29  ;;  %233 = vmatpush1.bf16.msra.mxu1 %v212_v29 }
  0x21   :  { %214 = vmatprep.subr.bf16.mxu0 %v247_v0  ;;  %225 = vmatprep.subr.bf16.mxu1 %v247_v0 }
  0x24   :  { %216 = vmatpush1.bf16.msra.mxu0 %v215_v32  ;;  %234 = vmatpush1.bf16.msra.mxu1 %v215_v32 }
  0x27   :  { %120 = vmatmul.mubr.f32.vlgmr.msra.gmra.mrb[0].mxu0 %v14_v33  ;;  %125 = vmatmul.mubr.f32.vlgmr.msra.gmra.mrb[0].mxu1 %v16_v34 }
  0x86   :  { %v41_v35 = vpop.permute.xlu0 %40 }
  0x8a   :  { %v46_v36 = vpop.permute.xlu0 %45 }
  0xfa   :  { %v121_v37 = vpop.f32.mrb[0].mxu0  ;;  %v126_v38 = vpop.f32.mrb[0].mxu1 }
  0xfb   :  { %v122_v39 = vadd.f32 %v121_v37, %v41_v35  ;;  %v127_v40 = vadd.f32 %v126_v38, %v46_v36  ;;  %v123_v41 = vpop.f32.mrb[1].mxu0  ;;  %v128_v42 = vpop.f32.mrb[1].mxu1 }
  0xfd   :  { %v132_v43 = vmul.f32 0.70710677, %v122_v39  ;;  %v133_v44 = vmul.f32 0.70710677, %v127_v40  ;;  %v130_v24 = vmul.f32 0.5, %v122_v39  ;;  %v131_v26 = vmul.f32 0.5, %v127_v40 }
  0xff   :  { %v138_v45 = vand.u32 2147483647, %v132_v43  ;;  %v139_v46 = vand.u32 2147483647, %v133_v44  ;;  %vm134_vm1 = vcmp.ge.f32.partialorder %v132_v43, 0.0  ;;  %vm135_vm2 = vcmp.ge.f32.partialorder %v133_v44, 0.0 }
 0x100   :  { %v136_v19 = vsel %vm134_vm1, 1.0, %v249_v18  ;;  %v137_v22 = vsel %vm135_vm2, 1.0, %v249_v18 }
 0x101   :  { %v140_v47 = vmul.f32 0.3275911, %v138_v45  ;;  %v141_v48 = vmul.f32 0.3275911, %v139_v46  ;;  %v164_v51 = vsub.f32 0.0, %v138_v45  ;;  %v165_v52 = vsub.f32 0.0, %v139_v46 }
 0x103   :  { %v142_v49 = vadd.f32 1.0, %v140_v47  ;;  %v143_v50 = vadd.f32 1.0, %v141_v48  ;;  %v166_v54 = vmul.f32 %v164_v51, %v138_v45  ;;  %v167_v57 = vmul.f32 %v165_v52, %v139_v46 }
 0x105   :  { %239 = vrcp.f32 %v142_v49  ;;  %v168_v60 = vmul.f32 1.442695, %v166_v54  ;;  %v170_v63 = vmul.f32 1.442695, %v167_v57 }
 0x106   :  { %241 = vrcp.f32 %v143_v50 }
 0x107   :  { %243 = vpow2.f32 %v168_v60 }
 0x108   :  { %245 = vpow2.f32 %v170_v63 }
 0x10f   :  { %v240_v53 = vpop.eup %239 }
 0x110   :  { %v242_v55 = vpop.eup %241  ;;  %v146_v56 = vmul.f32 1.0614054, %v240_v53 }
 0x111   :  { %v147_v58 = vmul.f32 1.0614054, %v242_v55  ;;  %v244_v12 = vpop.eup %243 }
 0x112   :  { %v148_v59 = vadd.f32 -1.4531521, %v146_v56  ;;  %v246_v14 = vpop.eup %245 }
 0x113   :  { %v149_v61 = vadd.f32 -1.4531521, %v147_v58 }
 0x114   :  { %v150_v62 = vmul.f32 %v240_v53, %v148_v59 }
 0x115   :  { %v151_v0 = vmul.f32 %v242_v55, %v149_v61 }
 0x116   :  { %v152_v1 = vadd.f32 1.4214138, %v150_v62 }
 0x117   :  { %v153_v2 = vadd.f32 1.4214138, %v151_v0 }
 0x118   :  { %v154_v3 = vmul.f32 %v240_v53, %v152_v1 }
 0x119   :  { %v155_v4 = vmul.f32 %v242_v55, %v153_v2 }
 0x11a   :  { %v156_v5 = vadd.f32 -0.28449672, %v154_v3 }
 0x11b   :  { %v157_v6 = vadd.f32 -0.28449672, %v155_v4 }
 0x11c   :  { %v158_v7 = vmul.f32 %v240_v53, %v156_v5 }
 0x11d   :  { %v159_v8 = vmul.f32 %v242_v55, %v157_v6 }
 0x11e   :  { %v160_v9 = vadd.f32 0.2548296, %v158_v7 }
 0x11f   :  { %v161_v10 = vadd.f32 0.2548296, %v159_v8 }
 0x120   :  { %v162_v11 = vmul.f32 %v240_v53, %v160_v9 }
 0x121   :  { %v163_v13 = vmul.f32 %v242_v55, %v161_v10 }
 0x122   :  { %v172_v15 = vmul.f32 %v244_v12, %v162_v11 }
 0x123   :  { %v173_v16 = vmul.f32 %v246_v14, %v163_v13 }
 0x124   :  { %v174_v17 = vsub.f32 1.0, %v172_v15 }
 0x125   :  { %v175_v20 = vsub.f32 1.0, %v173_v16 }
 0x126   :  { %v176_v21 = vmul.f32 %v174_v17, %v136_v19 }
 0x127   :  { %v177_v23 = vmul.f32 %v175_v20, %v137_v22 }
 0x128   :  { %v178_v25 = vadd.f32 1.0, %v176_v21 }
 0x129   :  { %v179_v27 = vadd.f32 1.0, %v177_v23 }
 0x12a   :  { %v180_v28 = vmul.f32 %v178_v25, %v130_v24 }
 0x12b   :  { %v181_v29 = vmul.f32 %v179_v27, %v131_v26 }
 0x12c   :  { %182 = vst [vmem:[%s369_s3] sm:$0xff] %v180_v28 }
 0x12d   :  { %183 = vst [vmem:[%s369_s3 + $0x8] sm:$0xff] %v181_v29 }

// kernel: decoder_forward.5
= control target key start
LH: loop header
LB: loop body
LE: loop exit
PB: predicated region body
PF: predicated region fallthrough
CT: control target
= control target key end

     0   :  { %s630_s12 = smov 0   ;;  %s632_s13 = smov 0   ;;  %s805_s0 = inlined_call_operand.vmem [shape: f32[8,144], index: 0, kind: input, shape index: {}]   ;;  %s806_s1 = inlined_call_operand.vmem [shape: f32[144,512], index: 1, kind: input, shape index: {}]   ;;  %s807_s2 = inlined_call_operand.vmem [shape: f32[8,1], index: 2, kind: input, shape index: {}]   ;;  %s808_s3 = inlined_call_operand.vmem [shape: f32[8,512], index: 3, kind: output, shape index: {}]  }
   0x1   :  { %s634_s14 = smov 0  }
   0x2 LB: > { %s498_s15 = sadd.s32 4294967295, %s606_s14   ;;  %s647_s16 = sadd.s32 1, %s606_s14   ;;  %s606_s14 = sphi %s634_s14, %s811_s14   ;;  %s602_s13 = sphi %s632_s13, %s810_s13   ;;  %s598_s12 = sphi %s630_s12, %s809_s12  }
   0x3   : > { %s38_s17 = ssub.s32 %s606_s14, %s647_s16  ;;  %s41_s18 = sadd.s32 1, %s602_s13 }
   0x4   : > { %p39_p0 = scmp.eq.s32.totalorder %s38_s17, 0  ;;  %p48_p1 = scmp.ne.s32.totalorder %s602_s13, %s598_s12 }
   0x5   : > { %p49_p2 = scmp.eq.s32.totalorder %s606_s14, 0  ;;  %p501_p4 = scmp.ge.s32.totalorder %s606_s14, 2 }
   0x6   : > { %s656_s19 = scalar_select %p39_p0, %s602_s13, %s41_s18  }
   0x7   : > { %p50_p3 = por %p49_p2, %p48_p1  ;;  %127 = sbr.rel (%p501_p4) target bundleno = 36 (0x24), region = 24 }
   0xe   : > { %130 = sbr.rel (!%p50_p3) target bundleno = 36 (0x24), region = 28  ;;  %s132_s20 = sand.u32 (%p50_p3), 1, %s602_s13  }
   0xf   : > { %s510_s21 = sshll.u32 (%p50_p3), %s606_s14, 4  ;;  %s547_s22 = smul.u32 (%p50_p3), 288, %s132_s20 }
  0x10   : > { %s664_s25 = scalar_lea.vmem (%p50_p3), %s806_s1, %s510_s21 }
  0x11   : > { %v150_v0 = vld [vmem:[%s664_s25] sm:$0xff] (%p50_p3)  ;;  %v152_v1 = vld [vmem:[%s664_s25 + $0x8] sm:$0xff] (%p50_p3)  ;;  %s672_s26 = scalar_lea.vmem (%p50_p3), [#allocation2], %s547_s22 }
  0x12   : > { %v154_v2 = vld [vmem:[%s664_s25 + $0x20] sm:$0xff] (%p50_p3)  ;;  %v156_v3 = vld [vmem:[%s664_s25 + $0x28] sm:$0xff] (%p50_p3)  ;;  %151 = vst [vmem:[%s672_s26] sm:$0xff] (%p50_p3), %v150_v0  ;;  %153 = vst [vmem:[%s672_s26 + $0x8] sm:$0xff] (%p50_p3), %v152_v1 }
  0x13   : > { %v158_v4 = vld [vmem:[%s664_s25 + $0x40] sm:$0xff] (%p50_p3)  ;;  %v160_v5 = vld [vmem:[%s664_s25 + $0x48] sm:$0xff] (%p50_p3)  ;;  %155 = vst [vmem:[%s672_s26 + $0x10] sm:$0xff] (%p50_p3), %v154_v2  ;;  %157 = vst [vmem:[%s672_s26 + $0x18] sm:$0xff] (%p50_p3), %v156_v3 }
  0x14   : > { %159 = vst [vmem:[%s672_s26 + $0x20] sm:$0xff] (%p50_p3), %v158_v4  ;;  %161 = vst [vmem:[%s672_s26 + $0x28] sm:$0xff] (%p50_p3), %v160_v5  ;;  %v162_v6 = vld [vmem:[%s664_s25 + $0x60] sm:$0xff] (%p50_p3)  ;;  %v164_v7 = vld [vmem:[%s664_s25 + $0x68] sm:$0xff] (%p50_p3) }
  0x15   : > { %v166_v8 = vld [vmem:[%s664_s25 + $0x80] sm:$0xff]  ;;  %163 = vst [vmem:[%s672_s26 + $0x30] sm:$0xff] %v162_v6  ;;  %165 = vst [vmem:[%s672_s26 + $0x38] sm:$0xff] %v164_v7  ;;  %v168_v9 = vld [vmem:[%s664_s25 + $0x88] sm:$0xff] }
  0x16   : > { %167 = vst [vmem:[%s672_s26 + $0x40] sm:$0xff] %v166_v8  ;;  %v170_v10 = vld [vmem:[%s664_s25 + $0xa0] sm:$0xff]  ;;  %v172_v11 = vld [vmem:[%s664_s25 + $0xa8] sm:$0xff]  ;;  %169 = vst [vmem:[%s672_s26 + $0x48] sm:$0xff] %v168_v9 }
  0x17   : > { %171 = vst [vmem:[%s672_s26 + $0x50] sm:$0xff] %v170_v10  ;;  %173 = vst [vmem:[%s672_s26 + $0x58] sm:$0xff] %v172_v11  ;;  %v174_v12 = vld [vmem:[%s664_s25 + $0xc0] sm:$0xff]  ;;  %v176_v13 = vld [vmem:[%s664_s25 + $0xc8] sm:$0xff] }
  0x18   : > { %v178_v14 = vld [vmem:[%s664_s25 + $0xe0] sm:$0xff]  ;;  %175 = vst [vmem:[%s672_s26 + $0x60] sm:$0xff] %v174_v12  ;;  %177 = vst [vmem:[%s672_s26 + $0x68] sm:$0xff] %v176_v13  ;;  %v180_v15 = vld [vmem:[%s664_s25 + $0xe8] sm:$0xff] }
  0x19   : > { %179 = vst [vmem:[%s672_s26 + $0x70] sm:$0xff] %v178_v14  ;;  %v182_v16 = vld [vmem:[%s664_s25 + $0x100] sm:$0xff]  ;;  %v184_v17 = vld [vmem:[%s664_s25 + $0x108] sm:$0xff]  ;;  %181 = vst [vmem:[%s672_s26 + $0x78] sm:$0xff] %v180_v15 }
  0x1a   : > { %183 = vst [vmem:[%s672_s26 + $0x80] sm:$0xff] %v182_v16  ;;  %185 = vst [vmem:[%s672_s26 + $0x88] sm:$0xff] %v184_v17  ;;  %v186_v18 = vld [vmem:[%s664_s25 + $0x120] sm:$0xff]  ;;  %v188_v19 = vld [vmem:[%s664_s25 + $0x128] sm:$0xff] }
  0x1b   : > { %v190_v20 = vld [vmem:[%s664_s25 + $0x140] sm:$0xff]  ;;  %187 = vst [vmem:[%s672_s26 + $0x90] sm:$0xff] %v186_v18  ;;  %189 = vst [vmem:[%s672_s26 + $0x98] sm:$0xff] %v188_v19  ;;  %v192_v21 = vld [vmem:[%s664_s25 + $0x148] sm:$0xff] }
  0x1c   : > { %191 = vst [vmem:[%s672_s26 + $0xa0] sm:$0xff] %v190_v20  ;;  %v194_v22 = vld [vmem:[%s664_s25 + $0x160] sm:$0xff]  ;;  %v196_v23 = vld [vmem:[%s664_s25 + $0x168] sm:$0xff]  ;;  %193 = vst [vmem:[%s672_s26 + $0xa8] sm:$0xff] %v192_v21 }
  0x1d   : > { %195 = vst [vmem:[%s672_s26 + $0xb0] sm:$0xff] %v194_v22  ;;  %197 = vst [vmem:[%s672_s26 + $0xb8] sm:$0xff] %v196_v23  ;;  %v198_v24 = vld [vmem:[%s664_s25 + $0x180] sm:$0xff]  ;;  %v200_v25 = vld [vmem:[%s664_s25 + $0x188] sm:$0xff] }
  0x1e   : > { %v202_v26 = vld [vmem:[%s664_s25 + $0x1a0] sm:$0xff]  ;;  %199 = vst [vmem:[%s672_s26 + $0xc0] sm:$0xff] %v198_v24  ;;  %201 = vst [vmem:[%s672_s26 + $0xc8] sm:$0xff] %v200_v25  ;;  %v204_v27 = vld [vmem:[%s664_s25 + $0x1a8] sm:$0xff] }
  0x1f   : > { %203 = vst [vmem:[%s672_s26 + $0xd0] sm:$0xff] %v202_v26  ;;  %v206_v28 = vld [vmem:[%s664_s25 + $0x1c0] sm:$0xff]  ;;  %v208_v29 = vld [vmem:[%s664_s25 + $0x1c8] sm:$0xff]  ;;  %205 = vst [vmem:[%s672_s26 + $0xd8] sm:$0xff] %v204_v27 }
  0x20   : > { %207 = vst [vmem:[%s672_s26 + $0xe0] sm:$0xff] %v206_v28  ;;  %209 = vst [vmem:[%s672_s26 + $0xe8] sm:$0xff] %v208_v29  ;;  %v210_v30 = vld [vmem:[%s664_s25 + $0x1e0] sm:$0xff]  ;;  %v212_v31 = vld [vmem:[%s664_s25 + $0x1e8] sm:$0xff] }
  0x21   : > { %v214_v32 = vld [vmem:[%s664_s25 + $0x200] sm:$0xff]  ;;  %211 = vst [vmem:[%s672_s26 + $0xf0] sm:$0xff] %v210_v30  ;;  %213 = vst [vmem:[%s672_s26 + $0xf8] sm:$0xff] %v212_v31  ;;  %v216_v33 = vld [vmem:[%s664_s25 + $0x208] sm:$0xff] }
  0x22   : > { %215 = vst [vmem:[%s672_s26 + $0x100] sm:$0xff] %v214_v32  ;;  %v218_v34 = vld [vmem:[%s664_s25 + $0x220] sm:$0xff]  ;;  %v220_v35 = vld [vmem:[%s664_s25 + $0x228] sm:$0xff]  ;;  %217 = vst [vmem:[%s672_s26 + $0x108] sm:$0xff] %v216_v33 }
  0x23   : > { %219 = vst [vmem:[%s672_s26 + $0x110] sm:$0xff] %v218_v34  ;;  %221 = vst [vmem:[%s672_s26 + $0x118] sm:$0xff] %v220_v35 }
  0x24 PF: > { %p504_p5 = scmp.ge.s32.totalorder %s606_s14, 1  ;;  %p226_p6 = scmp.lt.s32.totalorder %s606_s14, 3 }
  0x26   : > { %p227_p7 = pnand %p504_p5, %p226_p6 }
  0x27   : > { %s233_s27 = sand.u32 (!%p227_p7), 1, %s598_s12   ;;  %v264_v36 = vld [vmem:[%s805_s0 + $0x8] sm:$0xff] (!%p227_p7)  ;;  %vm307_vm0 = vcmask (!%p227_p7), 130048   ;;  %v301_v37 = vld [vmem:[%s807_s2] sm:$0xff] (!%p227_p7)  ;;  %v608_v38 = vmov (!%p227_p7), 0   ;;  %s505_s9 = sshll.u32 (!%p227_p7), %s498_s15, 1 }
  0x28   : > { %230 = sbr.rel (%p227_p7) target bundleno = 346 (0x15a), region = 51  ;;  %507 = vmatprep.mubr.msk.f32.mxu0 (!%p227_p7), %vm307_vm0, %v264_v36  ;;  %575 = vset.pattern.permute.xlu0 (!%p227_p7), %v608_v38  ;;  %v263_v29 = vld [vmem:[%s805_s0] sm:$0xff] (!%p227_p7)  ;;  %p258_p8 = scmp.lt.s32.totalorder (!%p227_p7), %s505_s9, 3 }
  0x29   : > { %s548_s5 = smul.u32 (!%p227_p7), 288, %s233_s27  ;;  %304 = vperm.xlu0 (!%p227_p7), %575, %v301_v37  }
  0x2b   : > { %s749_s6 = scalar_lea.vmem (!%p227_p7), [#allocation2], %s548_s5 }
  0x2c   : > { %v266_v39 = vld [vmem:[%s749_s6 + $0x8] sm:$0xff] (!%p227_p7)  ;;  %v268_v40 = vld [vmem:[%s749_s6 + $0x18] sm:$0xff] (!%p227_p7)  ;;  %v265_v41 = vld [vmem:[%s749_s6] sm:$0xff] (!%p227_p7) }
  0x2d   : > { %v511_v42 = vpack.c.bf16 (!%p227_p7), %v268_v40, %v266_v39  ;;  %v267_v43 = vld [vmem:[%s749_s6 + $0x10] sm:$0xff] (!%p227_p7)  ;;  %v270_v44 = vld [vmem:[%s749_s6 + $0x28] sm:$0xff] (!%p227_p7)  ;;  %v272_v45 = vld [vmem:[%s749_s6 + $0x38] sm:$0xff] (!%p227_p7) }
  0x2e   : > { %v513_v46 = vpack.c.bf16 (!%p227_p7), %v267_v43, %v265_v41  ;;  %v515_v47 = vpack.c.bf16 (!%p227_p7), %v272_v45, %v270_v44  ;;  %v269_v48 = vld [vmem:[%s749_s6 + $0x20] sm:$0xff] (!%p227_p7)  ;;  %v271_v49 = vld [vmem:[%s749_s6 + $0x30] sm:$0xff] (!%p227_p7)  ;;  %v274_v50 = vld [vmem:[%s749_s6 + $0x48] sm:$0xff] (!%p227_p7) }
  0x2f   : > { %512 = vmatprep.subr.bf16.mxu0 %v511_v42  ;;  %v276_v51 = vld [vmem:[%s749_s6 + $0x58] sm:$0xff]  ;;  %v517_v52 = vpack.c.bf16 %v271_v49, %v269_v48  ;;  %v273_v54 = vld [vmem:[%s749_s6 + $0x40] sm:$0xff]  ;;  %v275_v55 = vld [vmem:[%s749_s6 + $0x50] sm:$0xff]  ;;  %s813_s9 = smov (!%p258_p8, %s505_s9), 3 }
  0x30   : > { %514 = vmatpush1.bf16.msra.mxu0 %v513_v46  ;;  %v519_v53 = vpack.c.bf16 %v276_v51, %v274_v50  ;;  %v278_v56 = vld [vmem:[%s749_s6 + $0x68] sm:$0xff]  ;;  %v280_v57 = vld [vmem:[%s749_s6 + $0x78] sm:$0xff]  ;;  %v521_v58 = vpack.c.bf16 %v275_v55, %v273_v54  ;;  %v277_v60 = vld [vmem:[%s749_s6 + $0x60] sm:$0xff]  ;;  %s506_s10 = sshll.u32 %s813_s9, 3 }
  0x31   : > { %516 = vmatprep.subr.bf16.mxu0 %v515_v47  ;;  %v523_v59 = vpack.c.bf16 %v280_v57, %v278_v56  ;;  %v279_v61 = vld [vmem:[%s749_s6 + $0x70] sm:$0xff]  ;;  %v282_v62 = vld [vmem:[%s749_s6 + $0x88] sm:$0xff]  ;;  %v284_v63 = vld [vmem:[%s749_s6 + $0x98] sm:$0xff]  ;;  %s261_s14 = scalar_lea.vmem %s808_s3, %s506_s10 }
  0x32   : > { %v525_v0 = vpack.c.bf16 %v279_v61, %v277_v60  ;;  %v527_v1 = vpack.c.bf16 %v284_v63, %v282_v62  ;;  %v281_v2 = vld [vmem:[%s749_s6 + $0x80] sm:$0xff]  ;;  %v283_v3 = vld [vmem:[%s749_s6 + $0x90] sm:$0xff]  ;;  %v286_v4 = vld [vmem:[%s749_s6 + $0xa8] sm:$0xff] }
  0x33   : > { %v288_v5 = vld [vmem:[%s749_s6 + $0xb8] sm:$0xff]  ;;  %v529_v6 = vpack.c.bf16 %v283_v3, %v281_v2  ;;  %v285_v8 = vld [vmem:[%s749_s6 + $0xa0] sm:$0xff]  ;;  %v287_v9 = vld [vmem:[%s749_s6 + $0xb0] sm:$0xff] }
  0x34   : > { %518 = vmatpush1.bf16.msra.mxu0 %v517_v52  ;;  %v531_v7 = vpack.c.bf16 %v288_v5, %v286_v4  ;;  %v290_v10 = vld [vmem:[%s749_s6 + $0xc8] sm:$0xff]  ;;  %v292_v11 = vld [vmem:[%s749_s6 + $0xd8] sm:$0xff]  ;;  %v533_v12 = vpack.c.bf16 %v287_v9, %v285_v8  ;;  %v289_v14 = vld [vmem:[%s749_s6 + $0xc0] sm:$0xff] }
  0x35   : > { %520 = vmatprep.subr.bf16.mxu0 %v519_v53  ;;  %v535_v13 = vpack.c.bf16 %v292_v11, %v290_v10  ;;  %v291_v15 = vld [vmem:[%s749_s6 + $0xd0] sm:$0xff]  ;;  %v294_v16 = vld [vmem:[%s749_s6 + $0xe8] sm:$0xff]  ;;  %v296_v17 = vld [vmem:[%s749_s6 + $0xf8] sm:$0xff]  ;;  %v609_v10 = vmov -1.0  }
  0x36   : > { %v537_v18 = vpack.c.bf16 %v291_v15, %v289_v14  ;;  %v539_v19 = vpack.c.bf16 %v296_v17, %v294_v16  ;;  %v293_v20 = vld [vmem:[%s749_s6 + $0xe0] sm:$0xff]  ;;  %v295_v21 = vld [vmem:[%s749_s6 + $0xf0] sm:$0xff]  ;;  %v298_v22 = vld [vmem:[%s749_s6 + $0x108] sm:$0xff] }
  0x37   : > { %v300_v23 = vld [vmem:[%s749_s6 + $0x118] sm:$0xff]  ;;  %v541_v24 = vpack.c.bf16 %v295_v21, %v293_v20  ;;  %v297_v26 = vld [vmem:[%s749_s6 + $0x100] sm:$0xff]  ;;  %v299_v27 = vld [vmem:[%s749_s6 + $0x110] sm:$0xff] }
  0x38   : > { %522 = vmatpush1.bf16.msra.mxu0 %v521_v58  ;;  %v543_v25 = vpack.c.bf16 %v300_v23, %v298_v22  ;;  %v545_v28 = vpack.c.bf16 %v299_v27, %v297_v26 }
  0x39   : > { %524 = vmatprep.subr.bf16.mxu0 %v523_v59 }
  0x3c   : > { %526 = vmatpush1.bf16.msra.mxu0 %v525_v0 }
  0x3d   : > { %528 = vmatprep.subr.bf16.mxu0 %v527_v1 }
  0x40   : > { %530 = vmatpush1.bf16.msra.mxu0 %v529_v6 }
  0x41   : > { %532 = vmatprep.subr.bf16.mxu0 %v531_v7 }
  0x44   : > { %534 = vmatpush1.bf16.msra.mxu0 %v533_v12 }
  0x45   : > { %536 = vmatprep.subr.bf16.mxu0 %v535_v13 }
  0x48   : > { %538 = vmatpush1.bf16.msra.mxu0 %v537_v18 }
  0x49   : > { %540 = vmatprep.subr.bf16.mxu0 %v539_v19 }
  0x4c   : > { %542 = vmatpush1.bf16.msra.mxu0 %v541_v24 }
  0x4d   : > { %544 = vmatprep.subr.bf16.mxu0 %v543_v25 }
  0x50   : > { %546 = vmatpush1.bf16.msra.mxu0 %v545_v28 }
  0x53   : > { %376 = vmatmul.mubr.f32.vlgmr.msra.gmra.mrb[0].mxu0 %v263_v29 }
  0xa8   : > { %v305_v30 = vpop.permute.xlu0 %304 }
 0x126   : > { %v377_v31 = vpop.f32.mrb[0].mxu0 }
 0x127   : > { %v378_v32 = vadd.f32 %v377_v31, %v305_v30  ;;  %v379_v33 = vpop.f32.mrb[1].mxu0 }
 0x128   : > { %v380_v34 = vadd.f32 %v379_v33, %v305_v30 }
 0x129   : > { %v384_v35 = vmul.f32 0.70710677, %v378_v32  ;;  %v382_v16 = vmul.f32 0.5, %v378_v32 }
 0x12a   : > { %v385_v36 = vmul.f32 0.70710677, %v380_v34  ;;  %v383_v18 = vmul.f32 0.5, %v380_v34 }
 0x12b   : > { %v390_v37 = vand.u32 2147483647, %v384_v35  ;;  %vm386_vm1 = vcmp.ge.f32.partialorder %v384_v35, 0.0 }
 0x12c   : > { %v391_v38 = vand.u32 2147483647, %v385_v36  ;;  %vm387_vm2 = vcmp.ge.f32.partialorder %v385_v36, 0.0  ;;  %v388_v11 = vsel %vm386_vm1, 1.0, %v609_v10 }
 0x12d   : > { %v392_v39 = vmul.f32 0.3275911, %v390_v37  ;;  %v416_v43 = vsub.f32 0.0, %v390_v37  ;;  %v389_v14 = vsel %vm387_vm2, 1.0, %v609_v10 }
 0x12e   : > { %v393_v40 = vmul.f32 0.3275911, %v391_v38  ;;  %v417_v44 = vsub.f32 0.0, %v391_v38 }
 0x12f   : > { %v394_v41 = vadd.f32 1.0, %v392_v39  ;;  %v418_v46 = vmul.f32 %v416_v43, %v390_v37 }
 0x130   : > { %v395_v42 = vadd.f32 1.0, %v393_v40  ;;  %v419_v49 = vmul.f32 %v417_v44, %v391_v38 }
 0x131   : > { %576 = vrcp.f32 %v394_v41  ;;  %v420_v52 = vmul.f32 1.442695, %v418_v46 }
 0x132   : > { %578 = vrcp.f32 %v395_v42  ;;  %v422_v55 = vmul.f32 1.442695, %v419_v49 }
 0x133   : > { %580 = vpow2.f32 %v420_v52 }
 0x134   : > { %582 = vpow2.f32 %v422_v55 }
 0x13b   : > { %v577_v45 = vpop.eup %576 }
 0x13c   : > { %v579_v47 = vpop.eup %578  ;;  %v398_v48 = vmul.f32 1.0614054, %v577_v45 }
 0x13d   : > { %v399_v50 = vmul.f32 1.0614054, %v579_v47  ;;  %v581_v4 = vpop.eup %580 }
 0x13e   : > { %v400_v51 = vadd.f32 -1.4531521, %v398_v48  ;;  %v583_v6 = vpop.eup %582 }
 0x13f   : > { %v401_v53 = vadd.f32 -1.4531521, %v399_v50 }
 0x140   : > { %v402_v54 = vmul.f32 %v577_v45, %v400_v51 }
 0x141   : > { %v403_v56 = vmul.f32 %v579_v47, %v401_v53 }
 0x142   : > { %v404_v57 = vadd.f32 1.4214138, %v402_v54 }
 0x143   : > { %v405_v58 = vadd.f32 1.4214138, %v403_v56 }
 0x144   : > { %v406_v59 = vmul.f32 %v577_v45, %v404_v57 }
 0x145   : > { %v407_v60 = vmul.f32 %v579_v47, %v405_v58 }
 0x146   : > { %v408_v61 = vadd.f32 -0.28449672, %v406_v59 }
 0x147   : > { %v409_v62 = vadd.f32 -0.28449672, %v407_v60 }
 0x148   : > { %v410_v63 = vmul.f32 %v577_v45, %v408_v61 }
 0x149   : > { %v411_v0 = vmul.f32 %v579_v47, %v409_v62 }
 0x14a   : > { %v412_v1 = vadd.f32 0.2548296, %v410_v63 }
 0x14b   : > { %v413_v2 = vadd.f32 0.2548296, %v411_v0 }
 0x14c   : > { %v414_v3 = vmul.f32 %v577_v45, %v412_v1 }
 0x14d   : > { %v415_v5 = vmul.f32 %v579_v47, %v413_v2 }
 0x14e   : > { %v424_v7 = vmul.f32 %v581_v4, %v414_v3 }
 0x14f   : > { %v425_v8 = vmul.f32 %v583_v6, %v415_v5 }
 0x150   : > { %v426_v9 = vsub.f32 1.0, %v424_v7 }
 0x151   : > { %v427_v12 = vsub.f32 1.0, %v425_v8 }
 0x152   : > { %v428_v13 = vmul.f32 %v426_v9, %v388_v11 }
 0x153   : > { %v429_v15 = vmul.f32 %v427_v12, %v389_v14 }
 0x154   : > { %v430_v17 = vadd.f32 1.0, %v428_v13 }
 0x155   : > { %v431_v19 = vadd.f32 1.0, %v429_v15 }
 0x156   : > { %v432_v20 = vmul.f32 %v430_v17, %v382_v16 }
 0x157   : > { %v433_v21 = vmul.f32 %v431_v19, %v383_v18 }
 0x158   : > { %434 = vst [vmem:[%s261_s14] sm:$0xff] %v432_v20 }
 0x159   : > { %435 = vst [vmem:[%s261_s14 + $0x8] sm:$0xff] %v433_v21 }
 0x15a PF: > { %p10_p9 = scmp.ge.s32.totalorder %s647_s16, 4   ;;  %s809_s12 = smov %s602_s13 }
 0x15b   : > { %s810_s13 = smov %s656_s19  ;;  %s811_s14 = smov %s647_s16 }
 0x15c   :  { %12 = sbr.rel (!%p10_p9) target bundleno = 2 (0x2), region = 90 }

// kernel: decoder_forward.6
= control target key start
LH: loop header
LB: loop body
LE: loop exit
PB: predicated region body
PF: predicated region fallthrough
CT: control target
= control target key end

     0   :  { %s557_s12 = smov 0   ;;  %s559_s13 = smov 0   ;;  %s655_s0 = inlined_call_operand.vmem [shape: f32[8,72], index: 0, kind: input, shape index: {}]   ;;  %s656_s1 = inlined_call_operand.vmem [shape: f32[72,512], index: 1, kind: input, shape index: {}]   ;;  %s657_s2 = inlined_call_operand.vmem [shape: f32[8,1], index: 2, kind: input, shape index: {}]   ;;  %s658_s3 = inlined_call_operand.vmem [shape: f32[8,512], index: 3, kind: output, shape index: {}]  }
   0x1   :  { %s561_s14 = smov 0  }
   0x2 LB: > { %s443_s15 = sadd.s32 4294967295, %s532_s14   ;;  %s574_s16 = sadd.s32 1, %s532_s14   ;;  %s532_s14 = sphi %s561_s14, %s661_s14   ;;  %s528_s13 = sphi %s559_s13, %s660_s13   ;;  %s524_s12 = sphi %s557_s12, %s659_s12  }
   0x3   : > { %s38_s17 = ssub.s32 %s532_s14, %s574_s16  ;;  %s41_s18 = sadd.s32 1, %s528_s13 }
   0x4   : > { %p39_p0 = scmp.eq.s32.totalorder %s38_s17, 0  ;;  %p48_p1 = scmp.ne.s32.totalorder %s528_s13, %s524_s12 }
   0x5   : > { %p49_p2 = scmp.eq.s32.totalorder %s532_s14, 0  ;;  %p446_p4 = scmp.ge.s32.totalorder %s532_s14, 2 }
   0x6   : > { %s583_s19 = scalar_select %p39_p0, %s528_s13, %s41_s18  }
   0x7   : > { %p50_p3 = por %p49_p2, %p48_p1  ;;  %127 = sbr.rel (%p446_p4) target bundleno = 27 (0x1b), region = 24 }
   0xe   : > { %130 = sbr.rel (!%p50_p3) target bundleno = 27 (0x1b), region = 28  ;;  %s132_s20 = sand.u32 (%p50_p3), 1, %s528_s13  }
   0xf   : > { %s455_s21 = sshll.u32 (%p50_p3), %s532_s14, 4  ;;  %s472_s22 = smul.u32 (%p50_p3), 144, %s132_s20 }
  0x10   : > { %s591_s25 = scalar_lea.vmem (%p50_p3), %s656_s1, %s455_s21 }
  0x11   : > { %v150_v0 = vld [vmem:[%s591_s25] sm:$0xff] (%p50_p3)  ;;  %v152_v1 = vld [vmem:[%s591_s25 + $0x8] sm:$0xff] (%p50_p3)  ;;  %s134_s26 = scalar_lea.vmem (%p50_p3), [#allocation2], %s472_s22 }
  0x12   : > { %v154_v2 = vld [vmem:[%s591_s25 + $0x20] sm:$0xff] (%p50_p3)  ;;  %v156_v3 = vld [vmem:[%s591_s25 + $0x28] sm:$0xff] (%p50_p3)  ;;  %151 = vst [vmem:[%s134_s26] sm:$0xff] (%p50_p3), %v150_v0  ;;  %153 = vst [vmem:[%s134_s26 + $0x8] sm:$0xff] (%p50_p3), %v152_v1 }
  0x13   : > { %v158_v4 = vld [vmem:[%s591_s25 + $0x40] sm:$0xff] (%p50_p3)  ;;  %v160_v5 = vld [vmem:[%s591_s25 + $0x48] sm:$0xff] (%p50_p3)  ;;  %155 = vst [vmem:[%s134_s26 + $0x10] sm:$0xff] (%p50_p3), %v154_v2  ;;  %157 = vst [vmem:[%s134_s26 + $0x18] sm:$0xff] (%p50_p3), %v156_v3 }
  0x14   : > { %159 = vst [vmem:[%s134_s26 + $0x20] sm:$0xff] (%p50_p3), %v158_v4  ;;  %161 = vst [vmem:[%s134_s26 + $0x28] sm:$0xff] (%p50_p3), %v160_v5  ;;  %v162_v6 = vld [vmem:[%s591_s25 + $0x60] sm:$0xff] (%p50_p3)  ;;  %v164_v7 = vld [vmem:[%s591_s25 + $0x68] sm:$0xff] (%p50_p3) }
  0x15   : > { %v166_v8 = vld [vmem:[%s591_s25 + $0x80] sm:$0xff]  ;;  %163 = vst [vmem:[%s134_s26 + $0x30] sm:$0xff] %v162_v6  ;;  %165 = vst [vmem:[%s134_s26 + $0x38] sm:$0xff] %v164_v7  ;;  %v168_v9 = vld [vmem:[%s591_s25 + $0x88] sm:$0xff] }
  0x16   : > { %167 = vst [vmem:[%s134_s26 + $0x40] sm:$0xff] %v166_v8  ;;  %v170_v10 = vld [vmem:[%s591_s25 + $0xa0] sm:$0xff]  ;;  %v172_v11 = vld [vmem:[%s591_s25 + $0xa8] sm:$0xff]  ;;  %169 = vst [vmem:[%s134_s26 + $0x48] sm:$0xff] %v168_v9 }
  0x17   : > { %171 = vst [vmem:[%s134_s26 + $0x50] sm:$0xff] %v170_v10  ;;  %173 = vst [vmem:[%s134_s26 + $0x58] sm:$0xff] %v172_v11  ;;  %v174_v12 = vld [vmem:[%s591_s25 + $0xc0] sm:$0xff]  ;;  %v176_v13 = vld [vmem:[%s591_s25 + $0xc8] sm:$0xff] }
  0x18   : > { %v178_v14 = vld [vmem:[%s591_s25 + $0xe0] sm:$0xff]  ;;  %175 = vst [vmem:[%s134_s26 + $0x60] sm:$0xff] %v174_v12  ;;  %177 = vst [vmem:[%s134_s26 + $0x68] sm:$0xff] %v176_v13  ;;  %v180_v15 = vld [vmem:[%s591_s25 + $0xe8] sm:$0xff] }
  0x19   : > { %179 = vst [vmem:[%s134_s26 + $0x70] sm:$0xff] %v178_v14  ;;  %v182_v16 = vld [vmem:[%s591_s25 + $0x100] sm:$0xff]  ;;  %v184_v17 = vld [vmem:[%s591_s25 + $0x108] sm:$0xff]  ;;  %181 = vst [vmem:[%s134_s26 + $0x78] sm:$0xff] %v180_v15 }
  0x1a   : > { %183 = vst [vmem:[%s134_s26 + $0x80] sm:$0xff] %v182_v16  ;;  %185 = vst [vmem:[%s134_s26 + $0x88] sm:$0xff] %v184_v17 }
  0x1b PF: > { %p449_p5 = scmp.ge.s32.totalorder %s532_s14, 1  ;;  %p190_p6 = scmp.lt.s32.totalorder %s532_s14, 3 }
  0x1d   : > { %p191_p7 = pnand %p449_p5, %p190_p6 }
  0x1e   : > { %s197_s27 = sand.u32 (!%p191_p7), 1, %s524_s12   ;;  %v246_v18 = vld [vmem:[%s657_s2] sm:$0xff] (!%p191_p7)  ;;  %v534_v19 = vmov (!%p191_p7), 0.0   ;;  %v535_v20 = vmov (!%p191_p7), 0   ;;  %vm252_vm0 = vcmask (!%p191_p7), 588800   ;;  %s450_s7 = sshll.u32 (!%p191_p7), %s443_s15, 1 }
  0x1f   : > { %194 = sbr.rel (%p191_p7) target bundleno = 319 (0x13f), region = 51  ;;  %320 = vmatprep.mubr.f32.mxu0 (!%p191_p7), %v534_v19  ;;  %501 = vset.pattern.permute.xlu0 (!%p191_p7), %v535_v20  ;;  %v227_v47 = vld [vmem:[%s655_s0] sm:$0xff] (!%p191_p7)  ;;  %p222_p8 = scmp.lt.s32.totalorder (!%p191_p7), %s450_s7, 3 }
  0x20   : > { %s473_s30 = smul.u32 (!%p191_p7), 144, %s197_s27  ;;  %249 = vperm.xlu0 (!%p191_p7), %501, %v246_v18  }
  0x22   : > { %s617_s4 = scalar_lea.vmem (!%p191_p7), [#allocation2], %s473_s30 }
  0x23   : > { %v229_v21 = vld [vmem:[%s617_s4 + $0x8] sm:$0xff] (!%p191_p7)  ;;  %v231_v22 = vld [vmem:[%s617_s4 + $0x18] sm:$0xff] (!%p191_p7)  ;;  %v228_v23 = vld [vmem:[%s617_s4] sm:$0xff] (!%p191_p7) }
  0x24   : > { %v456_v24 = vpack.c.bf16 (!%p191_p7), %v231_v22, %v229_v21  ;;  %v230_v25 = vld [vmem:[%s617_s4 + $0x10] sm:$0xff] (!%p191_p7)  ;;  %v233_v26 = vld [vmem:[%s617_s4 + $0x28] sm:$0xff] (!%p191_p7)  ;;  %v235_v27 = vld [vmem:[%s617_s4 + $0x38] sm:$0xff] (!%p191_p7) }
  0x25   : > { %v458_v28 = vpack.c.bf16 (!%p191_p7), %v230_v25, %v228_v23  ;;  %v460_v29 = vpack.c.bf16 (!%p191_p7), %v235_v27, %v233_v26  ;;  %v232_v30 = vld [vmem:[%s617_s4 + $0x20] sm:$0xff] (!%p191_p7)  ;;  %v234_v31 = vld [vmem:[%s617_s4 + $0x30] sm:$0xff] (!%p191_p7)  ;;  %v237_v32 = vld [vmem:[%s617_s4 + $0x48] sm:$0xff] (!%p191_p7) }
  0x26   : > { %457 = vmatprep.subr.bf16.mxu0 %v456_v24  ;;  %v239_v33 = vld [vmem:[%s617_s4 + $0x58] sm:$0xff]  ;;  %v462_v34 = vpack.c.bf16 %v234_v31, %v232_v30  ;;  %v236_v36 = vld [vmem:[%s617_s4 + $0x40] sm:$0xff]  ;;  %v238_v37 = vld [vmem:[%s617_s4 + $0x50] sm:$0xff]  ;;  %s663_s7 = smov (!%p222_p8, %s450_s7), 3 }
  0x27   : > { %459 = vmatpush1.bf16.msra.mxu0 %v458_v28  ;;  %v464_v35 = vpack.c.bf16 %v239_v33, %v237_v32  ;;  %v241_v38 = vld [vmem:[%s617_s4 + $0x68] sm:$0xff]  ;;  %v243_v39 = vld [vmem:[%s617_s4 + $0x78] sm:$0xff]  ;;  %v466_v40 = vpack.c.bf16 %v238_v37, %v236_v36  ;;  %v240_v42 = vld [vmem:[%s617_s4 + $0x60] sm:$0xff]  ;;  %v536_v28 = vmov -1.0   ;;  %s451_s8 = sshll.u32 %s663_s7, 3 }
  0x28   : > { %461 = vmatprep.subr.bf16.mxu0 %v460_v29  ;;  %v468_v41 = vpack.c.bf16 %v243_v39, %v241_v38  ;;  %v242_v43 = vld [vmem:[%s617_s4 + $0x70] sm:$0xff]  ;;  %v245_v45 = vld [vmem:[%s617_s4 + $0x88] sm:$0xff]  ;;  %v244_v46 = vld [vmem:[%s617_s4 + $0x80] sm:$0xff]  ;;  %s225_s11 = scalar_lea.vmem %s658_s3, %s451_s8 }
  0x29   : > { %v470_v44 = vpack.c.bf16 %v242_v43, %v240_v42 }
  0x2b   : > { %463 = vmatpush1.bf16.msra.mxu0 %v462_v34 }
  0x2c   : > { %465 = vmatprep.subr.bf16.mxu0 %v464_v35 }
  0x2f   : > { %467 = vmatpush1.bf16.msra.mxu0 %v466_v40 }
  0x30   : > { %469 = vmatprep.subr.bf16.mxu0 %v468_v41 }
  0x33   : > { %471 = vmatpush1.bf16.msra.mxu0 %v470_v44 }
  0x34   : > { %272 = vmatprep.subr.mxu0 %v245_v45 }
  0x37   : > { %273 = vmatpush1.msra.mxu0 %v244_v46 }
  0x38   : > { %452 = vmatmul.mubr.msk.f32.vlgmr.msra.gmra.mrb[0].mxu0 %vm252_vm0, %v227_v47 }
  0x9f   : > { %v250_v48 = vpop.permute.xlu0 %249 }
 0x10b   : > { %v322_v49 = vpop.f32.mrb[0].mxu0 }
 0x10c   : > { %v323_v50 = vadd.f32 %v322_v49, %v250_v48  ;;  %v324_v51 = vpop.f32.mrb[1].mxu0 }
 0x10d   : > { %v325_v52 = vadd.f32 %v324_v51, %v250_v48 }
 0x10e   : > { %v329_v53 = vmul.f32 0.70710677, %v323_v50  ;;  %v327_v34 = vmul.f32 0.5, %v323_v50 }
 0x10f   : > { %v330_v54 = vmul.f32 0.70710677, %v325_v52  ;;  %v328_v36 = vmul.f32 0.5, %v325_v52 }
 0x110   : > { %v335_v55 = vand.u32 2147483647, %v329_v53  ;;  %vm331_vm1 = vcmp.ge.f32.partialorder %v329_v53, 0.0 }
 0x111   : > { %v336_v56 = vand.u32 2147483647, %v330_v54  ;;  %vm332_vm2 = vcmp.ge.f32.partialorder %v330_v54, 0.0  ;;  %v333_v29 = vsel %vm331_vm1, 1.0, %v536_v28 }
 0x112   : > { %v337_v57 = vmul.f32 0.3275911, %v335_v55  ;;  %v361_v61 = vsub.f32 0.0, %v335_v55  ;;  %v334_v32 = vsel %vm332_vm2, 1.0, %v536_v28 }
 0x113   : > { %v338_v58 = vmul.f32 0.3275911, %v336_v56  ;;  %v362_v62 = vsub.f32 0.0, %v336_v56 }
 0x114   : > { %v339_v59 = vadd.f32 1.0, %v337_v57  ;;  %v363_v0 = vmul.f32 %v361_v61, %v335_v55 }
 0x115   : > { %v340_v60 = vadd.f32 1.0, %v338_v58  ;;  %v364_v3 = vmul.f32 %v362_v62, %v336_v56 }
 0x116   : > { %502 = vrcp.f32 %v339_v59  ;;  %v365_v6 = vmul.f32 1.442695, %v363_v0 }
 0x117   : > { %504 = vrcp.f32 %v340_v60  ;;  %v367_v9 = vmul.f32 1.442695, %v364_v3 }
 0x118   : > { %506 = vpow2.f32 %v365_v6 }
 0x119   : > { %508 = vpow2.f32 %v367_v9 }
 0x120   : > { %v503_v63 = vpop.eup %502 }
 0x121   : > { %v505_v1 = vpop.eup %504  ;;  %v343_v2 = vmul.f32 1.0614054, %v503_v63 }
 0x122   : > { %v344_v4 = vmul.f32 1.0614054, %v505_v1  ;;  %v507_v22 = vpop.eup %506 }
 0x123   : > { %v345_v5 = vadd.f32 -1.4531521, %v343_v2  ;;  %v509_v24 = vpop.eup %508 }
 0x124   : > { %v346_v7 = vadd.f32 -1.4531521, %v344_v4 }
 0x125   : > { %v347_v8 = vmul.f32 %v503_v63, %v345_v5 }
 0x126   : > { %v348_v10 = vmul.f32 %v505_v1, %v346_v7 }
 0x127   : > { %v349_v11 = vadd.f32 1.4214138, %v347_v8 }
 0x128   : > { %v350_v12 = vadd.f32 1.4214138, %v348_v10 }
 0x129   : > { %v351_v13 = vmul.f32 %v503_v63, %v349_v11 }
 0x12a   : > { %v352_v14 = vmul.f32 %v505_v1, %v350_v12 }
 0x12b   : > { %v353_v15 = vadd.f32 -0.28449672, %v351_v13 }
 0x12c   : > { %v354_v16 = vadd.f32 -0.28449672, %v352_v14 }
 0x12d   : > { %v355_v17 = vmul.f32 %v503_v63, %v353_v15 }
 0x12e   : > { %v356_v18 = vmul.f32 %v505_v1, %v354_v16 }
 0x12f   : > { %v357_v19 = vadd.f32 0.2548296, %v355_v17 }
 0x130   : > { %v358_v20 = vadd.f32 0.2548296, %v356_v18 }
 0x131   : > { %v359_v21 = vmul.f32 %v503_v63, %v357_v19 }
 0x132   : > { %v360_v23 = vmul.f32 %v505_v1, %v358_v20 }
 0x133   : > { %v369_v25 = vmul.f32 %v507_v22, %v359_v21 }
 0x134   : > { %v370_v26 = vmul.f32 %v509_v24, %v360_v23 }
 0x135   : > { %v371_v27 = vsub.f32 1.0, %v369_v25 }
 0x136   : > { %v372_v30 = vsub.f32 1.0, %v370_v26 }
 0x137   : > { %v373_v31 = vmul.f32 %v371_v27, %v333_v29 }
 0x138   : > { %v374_v33 = vmul.f32 %v372_v30, %v334_v32 }
 0x139   : > { %v375_v35 = vadd.f32 1.0, %v373_v31 }
 0x13a   : > { %v376_v37 = vadd.f32 1.0, %v374_v33 }
 0x13b   : > { %v377_v38 = vmul.f32 %v375_v35, %v327_v34 }
 0x13c   : > { %v378_v39 = vmul.f32 %v376_v37, %v328_v36 }
 0x13d   : > { %379 = vst [vmem:[%s225_s11] sm:$0xff] %v377_v38 }
 0x13e   : > { %380 = vst [vmem:[%s225_s11 + $0x8] sm:$0xff] %v378_v39 }
 0x13f PF: > { %p10_p9 = scmp.ge.s32.totalorder %s574_s16, 4   ;;  %s659_s12 = smov %s528_s13 }
 0x140   : > { %s660_s13 = smov %s583_s19  ;;  %s661_s14 = smov %s574_s16 }
 0x141   :  { %12 = sbr.rel (!%p10_p9) target bundleno = 2 (0x2), region = 90 }

// kernel: decoder_forward.7
= control target key start
LH: loop header
LB: loop body
LE: loop exit
PB: predicated region body
PF: predicated region fallthrough
CT: control target
= control target key end

     0   :  { %s1295_s0 = inlined_call_operand.vmem [shape: f32[1,72], index: 0, kind: input, shape index: {}]   ;;  %s1296_s1 = inlined_call_operand.vmem [shape: f32[72,2048], index: 1, kind: input, shape index: {}]   ;;  %s1297_s2 = inlined_call_operand.<no memory space> [shape: f32[1,1], index: 2, kind: input, shape index: {}]   ;;  %s1298_s3 = inlined_call_operand.vmem [shape: f32[1,2048], index: 3, kind: output, shape index: {}]  }
   0x1   :  { %v8_v0 = vstv %s1297_s2 }
   0x2   :  { %9 = vst [vmem:[#allocation2] sm:$0x1] %v8_v0 }
   0x3   :  { %s1004_s14 = smov 0   ;;  %s1006_s15 = smov 0  }
   0x4   :  { %s1008_s16 = smov 0  }
   0x5 LB: > { %s829_s2 = sadd.s32 4294967295, %s976_s16   ;;  %s1021_s17 = sadd.s32 1, %s976_s16   ;;  %s976_s16 = sphi %s1008_s16, %s1301_s16   ;;  %s972_s15 = sphi %s1006_s15, %s1300_s15   ;;  %s968_s14 = sphi %s1004_s14, %s1299_s14  }
   0x6   : > { %s40_s18 = ssub.s32 %s976_s16, %s1021_s17  ;;  %s43_s19 = sadd.s32 1, %s972_s15 }
   0x7   : > { %p41_p0 = scmp.eq.s32.totalorder %s40_s18, 0  ;;  %p50_p1 = scmp.ne.s32.totalorder %s972_s15, %s968_s14 }
   0x8   : > { %p51_p2 = scmp.eq.s32.totalorder %s976_s16, 0  ;;  %p832_p4 = scmp.ge.s32.totalorder %s976_s16, 2 }
   0x9   : > { %s1030_s20 = scalar_select %p41_p0, %s972_s15, %s43_s19  }
   0xa   : > { %p52_p3 = por %p51_p2, %p50_p1  ;;  %129 = sbr.rel (%p832_p4) target bundleno = 58 (0x3a), region = 24 }
  0x11   : > { %132 = sbr.rel (!%p52_p3) target bundleno = 58 (0x3a), region = 28  ;;  %s134_s21 = sand.u32 (%p52_p3), 1, %s972_s15  }
  0x12   : > { %s843_s22 = sshll.u32 (%p52_p3), %s976_s16, 6  ;;  %s908_s23 = smul.u32 (%p52_p3), 576, %s134_s21 }
  0x13   : > { %s1038_s26 = scalar_lea.vmem (%p52_p3), %s1296_s1, %s843_s22 }
  0x14   : > { %v152_v1 = vld [vmem:[%s1038_s26] sm:$0xff] (%p52_p3)  ;;  %v154_v2 = vld [vmem:[%s1038_s26 + $0x8] sm:$0xff] (%p52_p3)  ;;  %v156_v3 = vld [vmem:[%s1038_s26 + $0x10] sm:$0xff] (%p52_p3)  ;;  %s1046_s27 = scalar_lea.vmem (%p52_p3), [#allocation3], %s908_s23 }
  0x15   : > { %v158_v4 = vld [vmem:[%s1038_s26 + $0x18] sm:$0xff] (%p52_p3)  ;;  %v160_v5 = vld [vmem:[%s1038_s26 + $0x20] sm:$0xff] (%p52_p3)  ;;  %v162_v6 = vld [vmem:[%s1038_s26 + $0x28] sm:$0xff] (%p52_p3)  ;;  %153 = vst [vmem:[%s1046_s27] sm:$0xff] (%p52_p3), %v152_v1 }
  0x16   : > { %155 = vst [vmem:[%s1046_s27 + $0x8] sm:$0xff] (%p52_p3), %v154_v2  ;;  %157 = vst [vmem:[%s1046_s27 + $0x10] sm:$0xff] (%p52_p3), %v156_v3  ;;  %v164_v7 = vld [vmem:[%s1038_s26 + $0x30] sm:$0xff] (%p52_p3)  ;;  %v166_v8 = vld [vmem:[%s1038_s26 + $0x38] sm:$0xff] (%p52_p3) }
  0x17   : > { %159 = vst [vmem:[%s1046_s27 + $0x18] sm:$0xff] (%p52_p3), %v158_v4  ;;  %161 = vst [vmem:[%s1046_s27 + $0x20] sm:$0xff] (%p52_p3), %v160_v5  ;;  %v168_v9 = vld [vmem:[%s1038_s26 + $0x80] sm:$0xff] (%p52_p3)  ;;  %v170_v10 = vld [vmem:[%s1038_s26 + $0x88] sm:$0xff] (%p52_p3) }
  0x18   : > { %163 = vst [vmem:[%s1046_s27 + $0x28] sm:$0xff] %v162_v6  ;;  %165 = vst [vmem:[%s1046_s27 + $0x30] sm:$0xff] %v164_v7  ;;  %v172_v11 = vld [vmem:[%s1038_s26 + $0x90] sm:$0xff]  ;;  %v174_v12 = vld [vmem:[%s1038_s26 + $0x98] sm:$0xff] }
  0x19   : > { %167 = vst [vmem:[%s1046_s27 + $0x38] sm:$0xff] %v166_v8  ;;  %169 = vst [vmem:[%s1046_s27 + $0x40] sm:$0xff] %v168_v9  ;;  %v176_v13 = vld [vmem:[%s1038_s26 + $0xa0] sm:$0xff]  ;;  %v178_v14 = vld [vmem:[%s1038_s26 + $0xa8] sm:$0xff] }
  0x1a   : > { %171 = vst [vmem:[%s1046_s27 + $0x48] sm:$0xff] %v170_v10  ;;  %173 = vst [vmem:[%s1046_s27 + $0x50] sm:$0xff] %v172_v11  ;;  %v180_v15 = vld [vmem:[%s1038_s26 + $0xb0] sm:$0xff]  ;;  %v182_v16 = vld [vmem:[%s1038_s26 + $0xb8] sm:$0xff] }
  0x1b   : > { %175 = vst [vmem:[%s1046_s27 + $0x58] sm:$0xff] %v174_v12  ;;  %177 = vst [vmem:[%s1046_s27 + $0x60] sm:$0xff] %v176_v13  ;;  %v184_v17 = vld [vmem:[%s1038_s26 + $0x100] sm:$0xff]  ;;  %v186_v18 = vld [vmem:[%s1038_s26 + $0x108] sm:$0xff] }
  0x1c   : > { %179 = vst [vmem:[%s1046_s27 + $0x68] sm:$0xff] %v178_v14  ;;  %181 = vst [vmem:[%s1046_s27 + $0x70] sm:$0xff] %v180_v15  ;;  %v188_v19 = vld [vmem:[%s1038_s26 + $0x110] sm:$0xff]  ;;  %v190_v20 = vld [vmem:[%s1038_s26 + $0x118] sm:$0xff] }
  0x1d   : > { %183 = vst [vmem:[%s1046_s27 + $0x78] sm:$0xff] %v182_v16  ;;  %185 = vst [vmem:[%s1046_s27 + $0x80] sm:$0xff] %v184_v17  ;;  %v192_v21 = vld [vmem:[%s1038_s26 + $0x120] sm:$0xff]  ;;  %v194_v22 = vld [vmem:[%s1038_s26 + $0x128] sm:$0xff] }
  0x1e   : > { %187 = vst [vmem:[%s1046_s27 + $0x88] sm:$0xff] %v186_v18  ;;  %189 = vst [vmem:[%s1046_s27 + $0x90] sm:$0xff] %v188_v19  ;;  %v196_v23 = vld [vmem:[%s1038_s26 + $0x130] sm:$0xff]  ;;  %v198_v24 = vld [vmem:[%s1038_s26 + $0x138] sm:$0xff] }
  0x1f   : > { %191 = vst [vmem:[%s1046_s27 + $0x98] sm:$0xff] %v190_v20  ;;  %193 = vst [vmem:[%s1046_s27 + $0xa0] sm:$0xff] %v192_v21  ;;  %v200_v25 = vld [vmem:[%s1038_s26 + $0x180] sm:$0xff]  ;;  %v202_v26 = vld [vmem:[%s1038_s26 + $0x188] sm:$0xff] }
  0x20   : > { %195 = vst [vmem:[%s1046_s27 + $0xa8] sm:$0xff] %v194_v22  ;;  %197 = vst [vmem:[%s1046_s27 + $0xb0] sm:$0xff] %v196_v23  ;;  %v204_v27 = vld [vmem:[%s1038_s26 + $0x190] sm:$0xff]  ;;  %v206_v28 = vld [vmem:[%s1038_s26 + $0x198] sm:$0xff] }
  0x21   : > { %199 = vst [vmem:[%s1046_s27 + $0xb8] sm:$0xff] %v198_v24  ;;  %201 = vst [vmem:[%s1046_s27 + $0xc0] sm:$0xff] %v200_v25  ;;  %v208_v29 = vld [vmem:[%s1038_s26 + $0x1a0] sm:$0xff]  ;;  %v210_v30 = vld [vmem:[%s1038_s26 + $0x1a8] sm:$0xff] }
  0x22   : > { %203 = vst [vmem:[%s1046_s27 + $0xc8] sm:$0xff] %v202_v26  ;;  %205 = vst [vmem:[%s1046_s27 + $0xd0] sm:$0xff] %v204_v27  ;;  %v212_v31 = vld [vmem:[%s1038_s26 + $0x1b0] sm:$0xff]  ;;  %v214_v32 = vld [vmem:[%s1038_s26 + $0x1b8] sm:$0xff] }
  0x23   : > { %207 = vst [vmem:[%s1046_s27 + $0xd8] sm:$0xff] %v206_v28  ;;  %209 = vst [vmem:[%s1046_s27 + $0xe0] sm:$0xff] %v208_v29  ;;  %v216_v33 = vld [vmem:[%s1038_s26 + $0x200] sm:$0xff]  ;;  %v218_v34 = vld [vmem:[%s1038_s26 + $0x208] sm:$0xff] }
  0x24   : > { %211 = vst [vmem:[%s1046_s27 + $0xe8] sm:$0xff] %v210_v30  ;;  %213 = vst [vmem:[%s1046_s27 + $0xf0] sm:$0xff] %v212_v31  ;;  %v220_v35 = vld [vmem:[%s1038_s26 + $0x210] sm:$0xff]  ;;  %v222_v36 = vld [vmem:[%s1038_s26 + $0x218] sm:$0xff] }
  0x25   : > { %215 = vst [vmem:[%s1046_s27 + $0xf8] sm:$0xff] %v214_v32  ;;  %217 = vst [vmem:[%s1046_s27 + $0x100] sm:$0xff] %v216_v33  ;;  %v224_v37 = vld [vmem:[%s1038_s26 + $0x220] sm:$0xff]  ;;  %v226_v38 = vld [vmem:[%s1038_s26 + $0x228] sm:$0xff] }
  0x26   : > { %219 = vst [vmem:[%s1046_s27 + $0x108] sm:$0xff] %v218_v34  ;;  %221 = vst [vmem:[%s1046_s27 + $0x110] sm:$0xff] %v220_v35  ;;  %v228_v39 = vld [vmem:[%s1038_s26 + $0x230] sm:$0xff]  ;;  %v230_v40 = vld [vmem:[%s1038_s26 + $0x238] sm:$0xff] }
  0x27   : > { %223 = vst [vmem:[%s1046_s27 + $0x118] sm:$0xff] %v222_v36  ;;  %225 = vst [vmem:[%s1046_s27 + $0x120] sm:$0xff] %v224_v37  ;;  %v232_v41 = vld [vmem:[%s1038_s26 + $0x280] sm:$0xff]  ;;  %v234_v42 = vld [vmem:[%s1038_s26 + $0x288] sm:$0xff] }
  0x28   : > { %227 = vst [vmem:[%s1046_s27 + $0x128] sm:$0xff] %v226_v38  ;;  %229 = vst [vmem:[%s1046_s27 + $0x130] sm:$0xff] %v228_v39  ;;  %v236_v43 = vld [vmem:[%s1038_s26 + $0x290] sm:$0xff]  ;;  %v238_v44 = vld [vmem:[%s1038_s26 + $0x298] sm:$0xff] }
  0x29   : > { %231 = vst [vmem:[%s1046_s27 + $0x138] sm:$0xff] %v230_v40  ;;  %233 = vst [vmem:[%s1046_s27 + $0x140] sm:$0xff] %v232_v41  ;;  %v240_v45 = vld [vmem:[%s1038_s26 + $0x2a0] sm:$0xff]  ;;  %v242_v46 = vld [vmem:[%s1038_s26 + $0x2a8] sm:$0xff] }
  0x2a   : > { %235 = vst [vmem:[%s1046_s27 + $0x148] sm:$0xff] %v234_v42  ;;  %237 = vst [vmem:[%s1046_s27 + $0x150] sm:$0xff] %v236_v43  ;;  %v244_v47 = vld [vmem:[%s1038_s26 + $0x2b0] sm:$0xff]  ;;  %v246_v48 = vld [vmem:[%s1038_s26 + $0x2b8] sm:$0xff] }
  0x2b   : > { %239 = vst [vmem:[%s1046_s27 + $0x158] sm:$0xff] %v238_v44  ;;  %241 = vst [vmem:[%s1046_s27 + $0x160] sm:$0xff] %v240_v45  ;;  %v248_v49 = vld [vmem:[%s1038_s26 + $0x300] sm:$0xff]  ;;  %v250_v50 = vld [vmem:[%s1038_s26 + $0x308] sm:$0xff] }
  0x2c   : > { %243 = vst [vmem:[%s1046_s27 + $0x168] sm:$0xff] %v242_v46  ;;  %245 = vst [vmem:[%s1046_s27 + $0x170] sm:$0xff] %v244_v47  ;;  %v252_v51 = vld [vmem:[%s1038_s26 + $0x310] sm:$0xff]  ;;  %v254_v52 = vld [vmem:[%s1038_s26 + $0x318] sm:$0xff] }
  0x2d   : > { %247 = vst [vmem:[%s1046_s27 + $0x178] sm:$0xff] %v246_v48  ;;  %249 = vst [vmem:[%s1046_s27 + $0x180] sm:$0xff] %v248_v49  ;;  %v256_v53 = vld [vmem:[%s1038_s26 + $0x320] sm:$0xff]  ;;  %v258_v54 = vld [vmem:[%s1038_s26 + $0x328] sm:$0xff] }
  0x2e   : > { %251 = vst [vmem:[%s1046_s27 + $0x188] sm:$0xff] %v250_v50  ;;  %253 = vst [vmem:[%s1046_s27 + $0x190] sm:$0xff] %v252_v51  ;;  %v260_v55 = vld [vmem:[%s1038_s26 + $0x330] sm:$0xff]  ;;  %v262_v56 = vld [vmem:[%s1038_s26 + $0x338] sm:$0xff] }
  0x2f   : > { %255 = vst [vmem:[%s1046_s27 + $0x198] sm:$0xff] %v254_v52  ;;  %257 = vst [vmem:[%s1046_s27 + $0x1a0] sm:$0xff] %v256_v53  ;;  %v264_v57 = vld [vmem:[%s1038_s26 + $0x380] sm:$0xff]  ;;  %v266_v58 = vld [vmem:[%s1038_s26 + $0x388] sm:$0xff] }
  0x30   : > { %259 = vst [vmem:[%s1046_s27 + $0x1a8] sm:$0xff] %v258_v54  ;;  %261 = vst [vmem:[%s1046_s27 + $0x1b0] sm:$0xff] %v260_v55  ;;  %v268_v59 = vld [vmem:[%s1038_s26 + $0x390] sm:$0xff]  ;;  %v270_v60 = vld [vmem:[%s1038_s26 + $0x398] sm:$0xff] }
  0x31   : > { %263 = vst [vmem:[%s1046_s27 + $0x1b8] sm:$0xff] %v262_v56  ;;  %265 = vst [vmem:[%s1046_s27 + $0x1c0] sm:$0xff] %v264_v57  ;;  %v272_v61 = vld [vmem:[%s1038_s26 + $0x3a0] sm:$0xff]  ;;  %v274_v62 = vld [vmem:[%s1038_s26 + $0x3a8] sm:$0xff] }
  0x32   : > { %267 = vst [vmem:[%s1046_s27 + $0x1c8] sm:$0xff] %v266_v58  ;;  %269 = vst [vmem:[%s1046_s27 + $0x1d0] sm:$0xff] %v268_v59  ;;  %v276_v63 = vld [vmem:[%s1038_s26 + $0x3b0] sm:$0xff]  ;;  %v278_v0 = vld [vmem:[%s1038_s26 + $0x3b8] sm:$0xff] }
  0x33   : > { %271 = vst [vmem:[%s1046_s27 + $0x1d8] sm:$0xff] %v270_v60  ;;  %273 = vst [vmem:[%s1046_s27 + $0x1e0] sm:$0xff] %v272_v61  ;;  %v280_v1 = vld [vmem:[%s1038_s26 + $0x400] sm:$0xff]  ;;  %v282_v2 = vld [vmem:[%s1038_s26 + $0x408] sm:$0xff] }
  0x34   : > { %275 = vst [vmem:[%s1046_s27 + $0x1e8] sm:$0xff] %v274_v62  ;;  %277 = vst [vmem:[%s1046_s27 + $0x1f0] sm:$0xff] %v276_v63  ;;  %v284_v3 = vld [vmem:[%s1038_s26 + $0x410] sm:$0xff]  ;;  %v286_v4 = vld [vmem:[%s1038_s26 + $0x418] sm:$0xff] }
  0x35   : > { %279 = vst [vmem:[%s1046_s27 + $0x1f8] sm:$0xff] %v278_v0  ;;  %281 = vst [vmem:[%s1046_s27 + $0x200] sm:$0xff] %v280_v1  ;;  %v288_v5 = vld [vmem:[%s1038_s26 + $0x420] sm:$0xff]  ;;  %v290_v6 = vld [vmem:[%s1038_s26 + $0x428] sm:$0xff] }
  0x36   : > { %283 = vst [vmem:[%s1046_s27 + $0x208] sm:$0xff] %v282_v2  ;;  %285 = vst [vmem:[%s1046_s27 + $0x210] sm:$0xff] %v284_v3  ;;  %v292_v7 = vld [vmem:[%s1038_s26 + $0x430] sm:$0xff]  ;;  %v294_v8 = vld [vmem:[%s1038_s26 + $0x438] sm:$0xff] }
  0x37   : > { %287 = vst [vmem:[%s1046_s27 + $0x218] sm:$0xff] %v286_v4  ;;  %289 = vst [vmem:[%s1046_s27 + $0x220] sm:$0xff] %v288_v5 }
  0x38   : > { %291 = vst [vmem:[%s1046_s27 + $0x228] sm:$0xff] %v290_v6  ;;  %293 = vst [vmem:[%s1046_s27 + $0x230] sm:$0xff] %v292_v7 }
  0x39   : > { %295 = vst [vmem:[%s1046_s27 + $0x238] sm:$0xff] %v294_v8 }
  0x3a PF: > { %p835_p5 = scmp.ge.s32.totalorder %s976_s16, 1  ;;  %p300_p6 = scmp.lt.s32.totalorder %s976_s16, 3 }
  0x3c   : > { %p301_p7 = pnand %p835_p5, %p300_p6 }
  0x3d   : > { %s307_s28 = sand.u32 (!%p301_p7), 1, %s968_s14   ;;  %v978_v9 = vmov (!%p301_p7), 0.0   ;;  %v408_v10 = vld [vmem:[#allocation2] sm:$0x1] (!%p301_p7)  ;;  %v979_v11 = vmov (!%p301_p7), 0   ;;  %vm418_vm0 = vcmask (!%p301_p7), 588800  }
  0x3e   : > { %304 = sbr.rel (%p301_p7) target bundleno = 346 (0x15a), region = 51  ;;  %486 = vmatprep.mubr.f32.mxu0 (!%p301_p7), %v978_v9  ;;  %557 = vmatprep.mubr.f32.mxu1 (!%p301_p7), %v978_v9  ;;  %v1235_v3 = vld [vmem:[%s1295_s0] sm:$0x1] (!%p301_p7)  ;;  %s836_s6 = sshll.u32 (!%p301_p7), %s829_s2, 3 }
  0x3f   : > { %s909_s29 = smul.u32 (!%p301_p7), 576, %s307_s28  ;;  %937 = vset.pattern.permute.xlu0 (!%p301_p7), %v979_v11  ;;  %p331_p8 = scmp.lt.s32.totalorder (!%p301_p7), %s836_s6, 15 }
  0x40   : > { %411 = vperm.xlu0 (!%p301_p7), %937, %v408_v10  }
  0x41   : > { %s1191_s30 = scalar_lea.vmem (!%p301_p7), [#allocation3], %s909_s29 }
  0x42   : > { %v337_v12 = vld [vmem:[%s1191_s30 + $0x8] sm:$0xff] (!%p301_p7)  ;;  %v339_v14 = vld [vmem:[%s1191_s30 + $0x18] sm:$0xff] (!%p301_p7)  ;;  %v336_v17 = vld [vmem:[%s1191_s30] sm:$0xff] (!%p301_p7) }
  0x43   : > { %v345_v13 = vld [vmem:[%s1191_s30 + $0x48] sm:$0xff] (!%p301_p7)  ;;  %v347_v16 = vld [vmem:[%s1191_s30 + $0x58] sm:$0xff] (!%p301_p7)  ;;  %v344_v18 = vld [vmem:[%s1191_s30 + $0x40] sm:$0xff] (!%p301_p7) }
  0x44   : > { %v844_v15 = vpack.c.bf16 (!%p301_p7), %v345_v13, %v337_v12  ;;  %v860_v19 = vpack.c.bf16 (!%p301_p7), %v347_v16, %v339_v14  ;;  %v846_v20 = vpack.c.bf16 (!%p301_p7), %v344_v18, %v336_v17  ;;  %v338_v21 = vld [vmem:[%s1191_s30 + $0x10] sm:$0xff] (!%p301_p7)  ;;  %v353_v23 = vld [vmem:[%s1191_s30 + $0x88] sm:$0xff] (!%p301_p7)  ;;  %v355_v26 = vld [vmem:[%s1191_s30 + $0x98] sm:$0xff] (!%p301_p7) }
  0x45   : > { %v346_v22 = vld [vmem:[%s1191_s30 + $0x50] sm:$0xff]  ;;  %v361_v25 = vld [vmem:[%s1191_s30 + $0xc8] sm:$0xff]  ;;  %v363_v27 = vld [vmem:[%s1191_s30 + $0xd8] sm:$0xff]  ;;  %s1303_s6 = smov (!%p331_p8, %s836_s6), 15 }
  0x46   : > { %845 = vmatprep.subr.bf16.mxu0 %v844_v15  ;;  %v862_v24 = vpack.c.bf16 %v346_v22, %v338_v21  ;;  %861 = vmatprep.subr.bf16.mxu1 %v860_v19  ;;  %v848_v28 = vpack.c.bf16 %v361_v25, %v353_v23  ;;  %v864_v29 = vpack.c.bf16 %v363_v27, %v355_v26  ;;  %v352_v30 = vld [vmem:[%s1191_s30 + $0x80] sm:$0xff]  ;;  %v354_v32 = vld [vmem:[%s1191_s30 + $0x90] sm:$0xff]  ;;  %v369_v35 = vld [vmem:[%s1191_s30 + $0x108] sm:$0xff]  ;;  %s333_s9 = scalar_lea.vmem %s1298_s3, %s1303_s6 }
  0x47   : > { %847 = vmatpush1.bf16.msra.mxu0 %v846_v20  ;;  %v360_v31 = vld [vmem:[%s1191_s30 + $0xc0] sm:$0xff]  ;;  %v362_v34 = vld [vmem:[%s1191_s30 + $0xd0] sm:$0xff]  ;;  %v377_v36 = vld [vmem:[%s1191_s30 + $0x148] sm:$0xff] }
  0x48   : > { %863 = vmatpush1.bf16.msra.mxu1 %v862_v24  ;;  %v850_v33 = vpack.c.bf16 %v360_v31, %v352_v30  ;;  %849 = vmatprep.subr.bf16.mxu0 %v848_v28  ;;  %v866_v37 = vpack.c.bf16 %v362_v34, %v354_v32  ;;  %v852_v38 = vpack.c.bf16 %v377_v36, %v369_v35  ;;  %v371_v39 = vld [vmem:[%s1191_s30 + $0x118] sm:$0xff]  ;;  %v368_v41 = vld [vmem:[%s1191_s30 + $0x100] sm:$0xff]  ;;  %v370_v44 = vld [vmem:[%s1191_s30 + $0x110] sm:$0xff] }
  0x49   : > { %865 = vmatprep.subr.bf16.mxu1 %v864_v29  ;;  %v379_v40 = vld [vmem:[%s1191_s30 + $0x158] sm:$0xff]  ;;  %v376_v43 = vld [vmem:[%s1191_s30 + $0x140] sm:$0xff]  ;;  %v378_v45 = vld [vmem:[%s1191_s30 + $0x150] sm:$0xff] }
  0x4a   : > { %v868_v42 = vpack.c.bf16 %v379_v40, %v371_v39  ;;  %v854_v46 = vpack.c.bf16 %v376_v43, %v368_v41  ;;  %v385_v47 = vld [vmem:[%s1191_s30 + $0x188] sm:$0xff]  ;;  %v387_v49 = vld [vmem:[%s1191_s30 + $0x198] sm:$0xff]  ;;  %v870_v50 = vpack.c.bf16 %v378_v45, %v370_v44  ;;  %v384_v53 = vld [vmem:[%s1191_s30 + $0x180] sm:$0xff] }
  0x4b   : > { %851 = vmatpush1.bf16.msra.mxu0 %v850_v33  ;;  %v393_v48 = vld [vmem:[%s1191_s30 + $0x1c8] sm:$0xff]  ;;  %v395_v52 = vld [vmem:[%s1191_s30 + $0x1d8] sm:$0xff]  ;;  %v392_v54 = vld [vmem:[%s1191_s30 + $0x1c0] sm:$0xff] }
  0x4c   : > { %867 = vmatpush1.bf16.msra.mxu1 %v866_v37  ;;  %853 = vmatprep.subr.bf16.mxu0 %v852_v38  ;;  %v856_v51 = vpack.c.bf16 %v393_v48, %v385_v47  ;;  %v872_v55 = vpack.c.bf16 %v395_v52, %v387_v49  ;;  %v386_v56 = vld [vmem:[%s1191_s30 + $0x190] sm:$0xff]  ;;  %v858_v58 = vpack.c.bf16 %v392_v54, %v384_v53  ;;  %v401_v60 = vld [vmem:[%s1191_s30 + $0x208] sm:$0xff]  ;;  %v403_v61 = vld [vmem:[%s1191_s30 + $0x218] sm:$0xff]  ;;  %v414_v53 = vlaneseq }
  0x4d   : > { %869 = vmatprep.subr.bf16.mxu1 %v868_v42  ;;  %v394_v57 = vld [vmem:[%s1191_s30 + $0x1d0] sm:$0xff]  ;;  %v341_v62 = vld [vmem:[%s1191_s30 + $0x28] sm:$0xff]  ;;  %v400_v63 = vld [vmem:[%s1191_s30 + $0x200] sm:$0xff] }
  0x4e   : > { %v874_v59 = vpack.c.bf16 %v394_v57, %v386_v56  ;;  %v349_v0 = vld [vmem:[%s1191_s30 + $0x68] sm:$0xff]  ;;  %v343_v1 = vld [vmem:[%s1191_s30 + $0x38] sm:$0xff]  ;;  %v340_v4 = vld [vmem:[%s1191_s30 + $0x20] sm:$0xff]  ;;  %v415_v54 = vshrl.u32 %v414_v53, 7 }
  0x4f   : > { %855 = vmatpush1.bf16.msra.mxu0 %v854_v46  ;;  %v351_v2 = vld [vmem:[%s1191_s30 + $0x78] sm:$0xff]  ;;  %v348_v5 = vld [vmem:[%s1191_s30 + $0x60] sm:$0xff]  ;;  %v342_v6 = vld [vmem:[%s1191_s30 + $0x30] sm:$0xff]  ;;  %v876_v12 = vpack.c.bf16 %v349_v0, %v341_v62 }
  0x50   : > { %871 = vmatpush1.bf16.msra.mxu1 %v870_v50  ;;  %857 = vmatprep.subr.bf16.mxu0 %v856_v51  ;;  %v350_v7 = vld [vmem:[%s1191_s30 + $0x70] sm:$0xff]  ;;  %v357_v8 = vld [vmem:[%s1191_s30 + $0xa8] sm:$0xff]  ;;  %v359_v13 = vld [vmem:[%s1191_s30 + $0xb8] sm:$0xff]  ;;  %v892_v15 = vpack.c.bf16 %v351_v2, %v343_v1  ;;  %v878_v16 = vpack.c.bf16 %v348_v5, %v340_v4  ;;  %v980_v2 = vmov 1966171168  }
  0x51   : > { %873 = vmatprep.subr.bf16.mxu1 %v872_v55  ;;  %v365_v10 = vld [vmem:[%s1191_s30 + $0xe8] sm:$0xff]  ;;  %v402_v11 = vld [vmem:[%s1191_s30 + $0x210] sm:$0xff]  ;;  %v367_v14 = vld [vmem:[%s1191_s30 + $0xf8] sm:$0xff]  ;;  %v894_v17 = vpack.c.bf16 %v350_v7, %v342_v6  ;;  %v416_v55 = vsub.s32 0, %v415_v54  ;;  %v727_v4 = vunpack.c.l.s4 %v980_v2 }
  0x52   : > { %v880_v18 = vpack.c.bf16 %v365_v10, %v357_v8  ;;  %v356_v19 = vld [vmem:[%s1191_s30 + $0xa0] sm:$0xff]  ;;  %v358_v21 = vld [vmem:[%s1191_s30 + $0xb0] sm:$0xff]  ;;  %v896_v22 = vpack.c.bf16 %v367_v14, %v359_v13  ;;  %v373_v24 = vld [vmem:[%s1191_s30 + $0x128] sm:$0xff] }
  0x53   : > { %859 = vmatpush1.bf16.msra.mxu0 %v858_v58  ;;  %v364_v20 = vld [vmem:[%s1191_s30 + $0xe0] sm:$0xff]  ;;  %v366_v23 = vld [vmem:[%s1191_s30 + $0xf0] sm:$0xff]  ;;  %v381_v25 = vld [vmem:[%s1191_s30 + $0x168] sm:$0xff] }
  0x54   : > { %875 = vmatpush1.bf16.msra.mxu1 %v874_v59  ;;  %438 = vmatprep.subr.mxu0 %v401_v60  ;;  %v375_v26 = vld [vmem:[%s1191_s30 + $0x138] sm:$0xff]  ;;  %v882_v28 = vpack.c.bf16 %v364_v20, %v356_v19  ;;  %v898_v29 = vpack.c.bf16 %v366_v23, %v358_v21  ;;  %v884_v30 = vpack.c.bf16 %v381_v25, %v373_v24  ;;  %v372_v31 = vld [vmem:[%s1191_s30 + $0x120] sm:$0xff]  ;;  %v374_v33 = vld [vmem:[%s1191_s30 + $0x130] sm:$0xff] }
  0x55   : > { %509 = vmatprep.subr.mxu1 %v403_v61  ;;  %v383_v27 = vld [vmem:[%s1191_s30 + $0x178] sm:$0xff]  ;;  %v380_v32 = vld [vmem:[%s1191_s30 + $0x160] sm:$0xff]  ;;  %v382_v35 = vld [vmem:[%s1191_s30 + $0x170] sm:$0xff] }
  0x56   : > { %v900_v34 = vpack.c.bf16 %v383_v27, %v375_v26  ;;  %v389_v36 = vld [vmem:[%s1191_s30 + $0x1a8] sm:$0xff]  ;;  %v391_v38 = vld [vmem:[%s1191_s30 + $0x1b8] sm:$0xff]  ;;  %v886_v40 = vpack.c.bf16 %v380_v32, %v372_v31  ;;  %v902_v41 = vpack.c.bf16 %v382_v35, %v374_v33  ;;  %v388_v43 = vld [vmem:[%s1191_s30 + $0x1a0] sm:$0xff] }
  0x57   : > { %439 = vmatpush1.msra.mxu0 %v400_v63  ;;  %v397_v37 = vld [vmem:[%s1191_s30 + $0x1e8] sm:$0xff]  ;;  %v399_v39 = vld [vmem:[%s1191_s30 + $0x1f8] sm:$0xff]  ;;  %v396_v44 = vld [vmem:[%s1191_s30 + $0x1e0] sm:$0xff] }
  0x58   : > { %510 = vmatpush1.msra.mxu1 %v402_v11  ;;  %837 = vmatmul.mubr.msk.f32.vlgmr.msra.gmra.mrb[0].mxu0 %vm418_vm0, %v1235_v3  ;;  %v888_v42 = vpack.c.bf16 %v397_v37, %v389_v36  ;;  %v904_v45 = vpack.c.bf16 %v399_v39, %v391_v38  ;;  %v390_v46 = vld [vmem:[%s1191_s30 + $0x1b0] sm:$0xff]  ;;  %v890_v48 = vpack.c.bf16 %v396_v44, %v388_v43  ;;  %v405_v49 = vld [vmem:[%s1191_s30 + $0x228] sm:$0xff]  ;;  %v407_v50 = vld [vmem:[%s1191_s30 + $0x238] sm:$0xff] }
  0x59   : > { %838 = vmatmul.mubr.msk.f32.vlgmr.msra.gmra.mrb[0].mxu1 %vm418_vm0, %v1235_v3  ;;  %877 = vmatprep.subr.bf16.mxu0 %v876_v12  ;;  %v398_v47 = vld [vmem:[%s1191_s30 + $0x1f0] sm:$0xff]  ;;  %v404_v51 = vld [vmem:[%s1191_s30 + $0x220] sm:$0xff] }
  0x5a   : > { %893 = vmatprep.subr.bf16.mxu1 %v892_v15  ;;  %879 = vmatpush1.bf16.msra.mxu0 %v878_v16  ;;  %v406_v52 = vld [vmem:[%s1191_s30 + $0x230] sm:$0xff] }
  0x5b   : > { %895 = vmatpush1.bf16.msra.mxu1 %v894_v17  ;;  %881 = vmatprep.subr.bf16.mxu0 %v880_v18 }
  0x5c   : > { %897 = vmatprep.subr.bf16.mxu1 %v896_v22  ;;  %628 = vmatprep.mubr.f32.mxu0 %v978_v9 }
  0x5d   : > { %699 = vmatprep.mubr.f32.mxu1 %v978_v9  ;;  %v906_v9 = vpack.c.bf16 %v398_v47, %v390_v46 }
  0x5e   : > { %883 = vmatpush1.bf16.msra.mxu0 %v882_v28 }
  0x5f   : > { %899 = vmatpush1.bf16.msra.mxu1 %v898_v29  ;;  %885 = vmatprep.subr.bf16.mxu0 %v884_v30 }
  0x60   : > { %901 = vmatprep.subr.bf16.mxu1 %v900_v34 }
  0x62   : > { %887 = vmatpush1.bf16.msra.mxu0 %v886_v40 }
  0x63   : > { %903 = vmatpush1.bf16.msra.mxu1 %v902_v41  ;;  %889 = vmatprep.subr.bf16.mxu0 %v888_v42 }
  0x64   : > { %905 = vmatprep.subr.bf16.mxu1 %v904_v45 }
  0x66   : > { %891 = vmatpush1.bf16.msra.mxu0 %v890_v48 }
  0x67   : > { %907 = vmatpush1.bf16.msra.mxu1 %v906_v9  ;;  %580 = vmatprep.subr.mxu0 %v405_v49 }
  0x68   : > { %651 = vmatprep.subr.mxu1 %v407_v50 }
  0x6a   : > { %581 = vmatpush1.msra.mxu0 %v404_v51 }
  0x6b   : > { %652 = vmatpush1.msra.mxu1 %v406_v52  ;;  %839 = vmatmul.mubr.msk.f32.vlgmr.msra.gmra.mrb[2].mxu0 %vm418_vm0, %v1235_v3 }
  0x6c   : > { %840 = vmatmul.mubr.msk.f32.vlgmr.msra.gmra.mrb[2].mxu1 %vm418_vm0, %v1235_v3  ;;  %v728_v3 = vunpack.c.0.s8 %v727_v4 }
  0x6e   : > { %v731_v7 = vsub.s32 %v728_v3, %v415_v54 }
  0xbf   : > { %v412_v56 = vpop.permute.xlu0 %411 }
  0xc0   : > { %v417_v57 = vrot.slane %v412_v56, %v416_v55 }
 0x12b   : > { %v488_v58 = vpop.f32.mrb[0].mxu0 }
 0x12c   : > { %v489_v59 = vadd.f32 %v488_v58, %v417_v57  ;;  %v559_v60 = vpop.f32.mrb[0].mxu1  ;;  %v490_v61 = vpop.f32.mrb[1].mxu0 }
 0x12d   : > { %v560_v62 = vadd.f32 %v559_v60, %v417_v57  ;;  %v491_v63 = vadd.f32 %v490_v61, %v417_v57  ;;  %v561_v0 = vpop.f32.mrb[1].mxu1 }
 0x12e   : > { %938 = vtanh.f32 %v489_v59  ;;  %v562_v1 = vadd.f32 %v561_v0, %v417_v57 }
 0x12f   : > { %940 = vtanh.f32 %v560_v62 }
 0x130   : > { %942 = vtanh.f32 %v491_v63 }
 0x131   : > { %944 = vtanh.f32 %v562_v1 }
 0x138   : > { %v939_v5 = vpop.eup %938 }
 0x139   : > { %v941_v6 = vpop.eup %940 }
 0x13a   : > { %v943_v8 = vpop.eup %942 }
 0x13b   : > { %v945_v10 = vpop.eup %944  ;;  %v722_v11 = vcombine.low %v939_v5, %v943_v8 }
 0x13c   : > { %v723_v12 = vcombine.low %v941_v6, %v945_v10 }
 0x13d   : > { %v732_v13 = vrot.slane %v722_v11, %v731_v7 }
 0x13e   : > { %v739_v14 = vrot.slane %v723_v12, %v731_v7  ;;  %v630_v15 = vpop.f32.mrb[2].mxu0 }
 0x13f   : > { %v631_v16 = vadd.f32 %v630_v15, %v417_v57  ;;  %v701_v17 = vpop.f32.mrb[2].mxu1  ;;  %v632_v18 = vpop.f32.mrb[3].mxu0 }
 0x140   : > { %v754_v19 = vcombine.low %v732_v13, %v739_v14  ;;  %v702_v20 = vadd.f32 %v701_v17, %v417_v57  ;;  %v633_v21 = vadd.f32 %v632_v18, %v417_v57  ;;  %v703_v22 = vpop.f32.mrb[3].mxu1 }
 0x141   : > { %946 = vtanh.f32 %v631_v16  ;;  %v704_v23 = vadd.f32 %v703_v22, %v417_v57 }
 0x142   : > { %948 = vtanh.f32 %v702_v20  ;;  %v762_v33 = vrot.slane %v754_v19, %v731_v7 }
 0x143   : > { %950 = vtanh.f32 %v633_v21 }
 0x144   : > { %952 = vtanh.f32 %v704_v23 }
 0x14b   : > { %v947_v24 = vpop.eup %946 }
 0x14c   : > { %v949_v25 = vpop.eup %948 }
 0x14d   : > { %v951_v26 = vpop.eup %950 }
 0x14e   : > { %v953_v27 = vpop.eup %952  ;;  %v724_v28 = vcombine.low %v947_v24, %v951_v26 }
 0x14f   : > { %v725_v29 = vcombine.low %v949_v25, %v953_v27 }
 0x150   : > { %v746_v30 = vrot.slane %v724_v28, %v731_v7 }
 0x151   : > { %v753_v31 = vrot.slane %v725_v29, %v731_v7 }
 0x153   : > { %v755_v32 = vcombine.low %v746_v30, %v753_v31 }
 0x155   : > { %v769_v34 = vrot.slane %v755_v32, %v731_v7 }
 0x157   : > { %v770_v35 = vcombine.low %v762_v33, %v769_v34 }
 0x159   : > { %772 = vst [vmem:[%s333_s9] sm:$0xff] %v770_v35 }
 0x15a PF: > { %p12_p9 = scmp.ge.s32.totalorder %s1021_s17, 4   ;;  %s1299_s14 = smov %s972_s15 }
 0x15b   : > { %s1300_s15 = smov %s1030_s20  ;;  %s1301_s16 = smov %s1021_s17 }
 0x15c   :  { %14 = sbr.rel (!%p12_p9) target bundleno = 5 (0x5), region = 90 }

</bundles_post_ra>
